<compile_context>
chip_gen: v5e
topology: v5e:2x2
jax: 0.10.0
libtpu: 0.0.40
codegen_flags: <defaults>
</compile_context>

<pallas_src>
import jax
import jax.numpy as jnp
from jax.experimental import pallas as pl
from jax.experimental.pallas import tpu as pltpu

N_TOKENS = 256  # fixed by nn.Linear(256, 256) gates


def _fusion_kernel(rgb_cls_ref, th_cls_ref, rgb_patch_ref, th_patch_ref,
                   w_rgb_gate_t_ref, w_th_gate_t_ref, out_ref):
    rgb_p = rgb_patch_ref[...]          # (TB, N, D)
    th_p = th_patch_ref[...]            # (TB, N, D)
    rgb_c = rgb_cls_ref[...]            # (TB, 1, D)
    th_c = th_cls_ref[...]              # (TB, 1, D)

    n = rgb_p.shape[1]

    # attn[b, n] = cls[b, :] . patch[b, n, :]
    # VPU broadcast-multiply + lane reduce over D (keeps the MXU free).
    attn_rgb = jnp.sum(rgb_p * rgb_c, axis=-1)                   # (TB, N)
    attn_th = jnp.sum(th_p * th_c, axis=-1)                      # (TB, N)

    # nn.Linear (no bias): y = x @ W^T; W^T pre-transposed in the wrapper,
    # so this is a lane-dense (TB,256) x (256,256) MXU matmul per modality.
    w_rgb = jnp.dot(attn_rgb, w_rgb_gate_t_ref[...],
                    preferred_element_type=jnp.float32)          # (TB, N)
    w_th = jnp.dot(attn_th, w_th_gate_t_ref[...],
                   preferred_element_type=jnp.float32)           # (TB, N)

    # F.normalize(cat([w_rgb, w_thermal], dim=1), p=2, dim=1), eps=1e-12
    sq = (jnp.sum(w_rgb * w_rgb, axis=-1, keepdims=True) +
          jnp.sum(w_th * w_th, axis=-1, keepdims=True))          # (TB, 1)
    denom = jnp.maximum(jnp.sqrt(sq), 1e-12)
    inv = 1.0 / denom                                            # (TB, 1) only

    # threshold = mean over the concatenated 2N-vector. denom > 0, so comparing
    # the unnormalized values against the unnormalized mean is equivalent to
    # the normalized comparison; the single `inv` scale is folded into the
    # kept weights just before the final broadcast-multiply.
    thr = (jnp.sum(w_rgb, axis=-1, keepdims=True) +
           jnp.sum(w_th, axis=-1, keepdims=True)) / (2.0 * n)    # (TB, 1)

    w_rgb_g = jnp.where(w_rgb < thr, 0.0, w_rgb * inv)           # (TB, N)
    w_th_g = jnp.where(w_th < thr, 0.0, w_th * inv)              # (TB, N)

    # x_fused = w_rgb * rgb_patch + w_thermal * thermal_patch
    fused = w_rgb_g[:, :, None] * rgb_p + w_th_g[:, :, None] * th_p
    out_ref[...] = fused.astype(out_ref.dtype)


def rgbt_fusion(rgb_cls, rgb_patch, thermal_cls, thermal_patch,
                w_rgb_gate, w_thermal_gate, *, tb_max=None):
    B, N, D = rgb_patch.shape
    assert N == N_TOKENS, "gate Linear(256,256) fixes the token count to 256"

    # Pick the batch tile cap from the part's VMEM: 64 on 128-MiB parts
    # (v5e/v6e), 32 on the 64-MiB v7x.  Guarded: fall back to the
    # conservative 32 if the query is unavailable.
    if tb_max is None:
        try:
            vmem_cap = int(getattr(pltpu.get_tpu_info(),
                                   "vmem_capacity_bytes", 64 * 1024 * 1024))
        except Exception:
            vmem_cap = 64 * 1024 * 1024
        tb_max = 64 if vmem_cap >= 128 * 1024 * 1024 else 32

    # At least 2 grid steps whenever B >= 2 (both v7x TensorCores get work and
    # the single-step "no pipelining" case is avoided).  No padding of the big
    # patch tensors: a ragged last block is handled by Pallas masked
    # reads/writes, and every row's math is independent of the others.
    TB = 1 if B < 2 else min(tb_max, pl.cdiv(B, 2))
    grid = (pl.cdiv(B, TB),)

    # cls as (B, 1, D): last two block dims are (1, D) -> no (8,128) constraint
    # on TB, and no per-step sub-vreg DMAs.
    rgb_cls3 = rgb_cls[:, None, :]
    thermal_cls3 = thermal_cls[:, None, :]

    # Pre-transpose the gate weights once so the kernel does attn @ W^T directly.
    w_rgb_gate_t = w_rgb_gate.T
    w_thermal_gate_t = w_thermal_gate.T

    cls_spec = pl.BlockSpec((TB, 1, D), lambda b: (b, 0, 0))
    patch_spec = pl.BlockSpec((TB, N, D), lambda b: (b, 0, 0))
    out_spec = pl.BlockSpec((TB, N, D), lambda b: (b, 0, 0))
    # Gate weights: constant index_map, fetched once -> single-buffer them.
    try:
        gate_spec = pl.BlockSpec((N, N), lambda b: (0, 0),
                                 pipeline_mode=pl.Buffered(1))
    except TypeError:  # older BlockSpec signature
        gate_spec = pl.BlockSpec((N, N), lambda b: (0, 0))

    # VMEM limit sized to need (not the physical cap): 3 streamed (TB,N,D)
    # blocks double-buffered + ~3 Mosaic-materialized temporaries of the same
    # size + gate weights + fixed headroom for internal scratch.
    itemsize = jnp.dtype(rgb_patch.dtype).itemsize
    block_bytes = TB * N * D * itemsize
    vmem_need = 9 * block_bytes + 2 * N * N * 4 + (6 << 20)
    vmem_limit = int(min(max(vmem_need, 16 << 20), 96 << 20))

    # Advisory cost estimate: attn dots + 2 gate matmuls + final combine.
    flops = 4 * B * N * D + 4 * B * N * N + 4 * B * N * D + 8 * B * N
    bytes_accessed = itemsize * (3 * B * N * D + 2 * B * D) + 4 * 2 * N * N
    cost = pl.CostEstimate(flops=flops, transcendentals=0,
                           bytes_accessed=bytes_accessed)

    out = pl.pallas_call(
        _fusion_kernel,
        out_shape=jax.ShapeDtypeStruct((B, N, D), rgb_patch.dtype),
        grid_spec=pltpu.PrefetchScalarGridSpec(
            num_scalar_prefetch=0,
            grid=grid,
            in_specs=[cls_spec, cls_spec, patch_spec, patch_spec,
                      gate_spec, gate_spec],
            out_specs=out_spec,
        ),
        compiler_params=pltpu.CompilerParams(
            dimension_semantics=("parallel",),
            vmem_limit_bytes=vmem_limit),
        cost_estimate=cost,
    )(rgb_cls3, thermal_cls3, rgb_patch, thermal_patch,
      w_rgb_gate_t, w_thermal_gate_t)

    return out


def rgbt_fusion_reference(rgb_cls, rgb_patch, thermal_cls, thermal_patch,
                          w_rgb_gate, w_thermal_gate):
    # Pure-JAX reference mirroring the torch forward.
    N = rgb_patch.shape[1]
    attn_r = jnp.einsum('bd,bnd->bn', rgb_cls, rgb_patch)
    attn_t = jnp.einsum('bd,bnd->bn', thermal_cls, thermal_patch)
    w_r = attn_r @ w_rgb_gate.T
    w_t = attn_t @ w_thermal_gate.T
    w = jnp.concatenate([w_r, w_t], axis=1)
    norm = jnp.maximum(jnp.sqrt(jnp.sum(w * w, axis=1, keepdims=True)), 1e-12)
    w = w / norm
    thr = jnp.mean(w, axis=1, keepdims=True)
    w = jnp.where(w < thr, jnp.zeros_like(w), w)
    w_r = w[:, :N, None]
    w_t = w[:, N:, None]
    return w_r * rgb_patch + w_t * thermal_patch


if __name__ == "__main__":
    B, N, D = 2, N_TOKENS, 128

    key = jax.random.PRNGKey(0)
    k1, k2, k3, k4, k5, k6 = jax.random.split(key, 6)

    rgb_cls = jax.random.normal(k1, (B, D), dtype=jnp.float32)
    thermal_cls = jax.random.normal(k2, (B, D), dtype=jnp.float32)
    rgb_patch = jax.random.normal(k3, (B, N, D), dtype=jnp.float32)
    thermal_patch = jax.random.normal(k4, (B, N, D), dtype=jnp.float32)

    # nn.Linear(256, 256, bias=False) default init: U(-1/sqrt(256), 1/sqrt(256))
    bound = 1.0 / (N ** 0.5)
    w_rgb_gate = jax.random.uniform(k5, (N, N), dtype=jnp.float32,
                                    minval=-bound, maxval=bound)
    w_thermal_gate = jax.random.uniform(k6, (N, N), dtype=jnp.float32,
                                        minval=-bound, maxval=bound)

    out = rgbt_fusion(rgb_cls, rgb_patch, thermal_cls, thermal_patch,
                      w_rgb_gate, w_thermal_gate)
    out = jax.block_until_ready(out)

    ref = jax.block_until_ready(
        rgbt_fusion_reference(rgb_cls, rgb_patch, thermal_cls, thermal_patch,
                              w_rgb_gate, w_thermal_gate))

    assert out.shape == (B, N, D)
    assert jnp.all(jnp.isfinite(out))
    assert jnp.allclose(out, ref, rtol=2e-3, atol=2e-3)
    print("KERNEL_OK")
</pallas_src>

<mosaic_0001>
module attributes {stable_mosaic.version = 11 : i64} {
  func.func @_fusion_kernel(%arg0: i32, %arg1: memref<1x1x128xf32, #tpu.memory_space<vmem>>, %arg2: memref<1x1x128xf32, #tpu.memory_space<vmem>>, %arg3: memref<1x256x128xf32, #tpu.memory_space<vmem>>, %arg4: memref<1x256x128xf32, #tpu.memory_space<vmem>>, %arg5: memref<256x256xf32, #tpu.memory_space<vmem>>, %arg6: memref<256x256xf32, #tpu.memory_space<vmem>>, %arg7: memref<1x256x128xf32, #tpu.memory_space<vmem>>) attributes {dimension_semantics = [#tpu.dimension_semantics<parallel>], iteration_bounds = array<i64: 2>, scalar_prefetch = 0 : i64, scratch_operands = 0 : i64, tpu.core_type = #tpu.core_type<tc>, window_params = [{transform_indices = @transform_0, window_bounds = array<i64: 1, 1, 128>}, {transform_indices = @transform_1, window_bounds = array<i64: 1, 1, 128>}, {transform_indices = @transform_2, window_bounds = array<i64: 1, 256, 128>}, {transform_indices = @transform_3, window_bounds = array<i64: 1, 256, 128>}, {pipeline_mode = #tpu.pipeline_mode<synchronous>, transform_indices = @transform_4, window_bounds = array<i64: 256, 256>}, {pipeline_mode = #tpu.pipeline_mode<synchronous>, transform_indices = @transform_5, window_bounds = array<i64: 256, 256>}, {transform_indices = @transform_6, window_bounds = array<i64: 1, 256, 128>}]} {
    %c0 = arith.constant 0 : index
    %c0_0 = arith.constant 0 : index
    %c0_1 = arith.constant 0 : index
    %0 = vector.load %arg3[%c0, %c0_0, %c0_1] : memref<1x256x128xf32, #tpu.memory_space<vmem>>, vector<1x256x128xf32>
    %c0_2 = arith.constant 0 : index
    %c0_3 = arith.constant 0 : index
    %c0_4 = arith.constant 0 : index
    %1 = vector.load %arg4[%c0_2, %c0_3, %c0_4] : memref<1x256x128xf32, #tpu.memory_space<vmem>>, vector<1x256x128xf32>
    %c0_5 = arith.constant 0 : index
    %c0_6 = arith.constant 0 : index
    %c0_7 = arith.constant 0 : index
    %2 = vector.load %arg1[%c0_5, %c0_6, %c0_7] : memref<1x1x128xf32, #tpu.memory_space<vmem>>, vector<1x1x128xf32>
    %c0_8 = arith.constant 0 : index
    %c0_9 = arith.constant 0 : index
    %c0_10 = arith.constant 0 : index
    %3 = vector.load %arg2[%c0_8, %c0_9, %c0_10] : memref<1x1x128xf32, #tpu.memory_space<vmem>>, vector<1x1x128xf32>
    %4 = vector.broadcast %2 : vector<1x1x128xf32> to vector<1x256x128xf32>
    %5 = arith.mulf %0, %4 : vector<1x256x128xf32>
    %cst = arith.constant dense<0.000000e+00> : vector<1x256xf32>
    %6 = vector.multi_reduction <add>, %5, %cst [2] : vector<1x256x128xf32> to vector<1x256xf32>
    %7 = vector.broadcast %3 : vector<1x1x128xf32> to vector<1x256x128xf32>
    %8 = arith.mulf %1, %7 : vector<1x256x128xf32>
    %cst_11 = arith.constant dense<0.000000e+00> : vector<1x256xf32>
    %9 = vector.multi_reduction <add>, %8, %cst_11 [2] : vector<1x256x128xf32> to vector<1x256xf32>
    %c0_12 = arith.constant 0 : index
    %c0_13 = arith.constant 0 : index
    %10 = vector.load %arg5[%c0_12, %c0_13] : memref<256x256xf32, #tpu.memory_space<vmem>>, vector<256x256xf32>
    %cst_14 = arith.constant dense<0.000000e+00> : vector<1x256xf32>
    %11 = tpu.matmul %6, %10, %cst_14 {dimension_numbers = #tpu.dot_dimension_numbers<[1], [0], [0], [1], [0, 0, 1, 1], [], []>} : vector<1x256xf32>, vector<256x256xf32>, vector<1x256xf32> -> vector<1x256xf32>
    %c0_15 = arith.constant 0 : index
    %c0_16 = arith.constant 0 : index
    %12 = vector.load %arg6[%c0_15, %c0_16] : memref<256x256xf32, #tpu.memory_space<vmem>>, vector<256x256xf32>
    %cst_17 = arith.constant dense<0.000000e+00> : vector<1x256xf32>
    %13 = tpu.matmul %9, %12, %cst_17 {dimension_numbers = #tpu.dot_dimension_numbers<[1], [0], [0], [1], [0, 0, 1, 1], [], []>} : vector<1x256xf32>, vector<256x256xf32>, vector<1x256xf32> -> vector<1x256xf32>
    %14 = arith.mulf %11, %11 : vector<1x256xf32>
    %cst_18 = arith.constant dense<0.000000e+00> : vector<1xf32>
    %15 = vector.multi_reduction <add>, %14, %cst_18 [1] : vector<1x256xf32> to vector<1xf32>
    %16 = vector.shape_cast %15 : vector<1xf32> to vector<1x1xf32>
    %17 = arith.mulf %13, %13 : vector<1x256xf32>
    %cst_19 = arith.constant dense<0.000000e+00> : vector<1xf32>
    %18 = vector.multi_reduction <add>, %17, %cst_19 [1] : vector<1x256xf32> to vector<1xf32>
    %19 = vector.shape_cast %18 : vector<1xf32> to vector<1x1xf32>
    %20 = arith.addf %16, %19 : vector<1x1xf32>
    %21 = math.sqrt %20 : vector<1x1xf32>
    %cst_20 = arith.constant 9.99999996E-13 : f32
    %22 = vector.broadcast %cst_20 : f32 to vector<1x1xf32>
    %23 = arith.maximumf %21, %22 : vector<1x1xf32>
    %cst_21 = arith.constant 1.000000e+00 : f32
    %24 = vector.broadcast %cst_21 : f32 to vector<1x1xf32>
    %25 = arith.divf %24, %23 : vector<1x1xf32>
    %cst_22 = arith.constant dense<0.000000e+00> : vector<1xf32>
    %26 = vector.multi_reduction <add>, %11, %cst_22 [1] : vector<1x256xf32> to vector<1xf32>
    %27 = vector.shape_cast %26 : vector<1xf32> to vector<1x1xf32>
    %cst_23 = arith.constant dense<0.000000e+00> : vector<1xf32>
    %28 = vector.multi_reduction <add>, %13, %cst_23 [1] : vector<1x256xf32> to vector<1xf32>
    %29 = vector.shape_cast %28 : vector<1xf32> to vector<1x1xf32>
    %30 = arith.addf %27, %29 : vector<1x1xf32>
    %cst_24 = arith.constant 5.120000e+02 : f32
    %31 = vector.broadcast %cst_24 : f32 to vector<1x1xf32>
    %32 = arith.divf %30, %31 : vector<1x1xf32>
    %33 = vector.broadcast %32 : vector<1x1xf32> to vector<1x256xf32>
    %34 = arith.cmpf olt, %11, %33 : vector<1x256xf32>
    %35 = vector.broadcast %25 : vector<1x1xf32> to vector<1x256xf32>
    %36 = arith.mulf %11, %35 : vector<1x256xf32>
    %cst_25 = arith.constant 0.000000e+00 : f32
    %37 = vector.broadcast %cst_25 : f32 to vector<1x256xf32>
    %38 = arith.select %34, %37, %36 : vector<1x256xi1>, vector<1x256xf32>
    %39 = vector.broadcast %32 : vector<1x1xf32> to vector<1x256xf32>
    %40 = arith.cmpf olt, %13, %39 : vector<1x256xf32>
    %41 = vector.broadcast %25 : vector<1x1xf32> to vector<1x256xf32>
    %42 = arith.mulf %13, %41 : vector<1x256xf32>
    %cst_26 = arith.constant 0.000000e+00 : f32
    %43 = vector.broadcast %cst_26 : f32 to vector<1x256xf32>
    %44 = arith.select %40, %43, %42 : vector<1x256xi1>, vector<1x256xf32>
    %45 = vector.shape_cast %38 : vector<1x256xf32> to vector<1x256x1xf32>
    %46 = vector.broadcast %45 : vector<1x256x1xf32> to vector<1x256x128xf32>
    %47 = arith.mulf %46, %0 : vector<1x256x128xf32>
    %48 = vector.shape_cast %44 : vector<1x256xf32> to vector<1x256x1xf32>
    %49 = vector.broadcast %48 : vector<1x256x1xf32> to vector<1x256x128xf32>
    %50 = arith.mulf %49, %1 : vector<1x256x128xf32>
    %51 = arith.addf %47, %50 : vector<1x256x128xf32>
    %c0_27 = arith.constant 0 : index
    %c0_28 = arith.constant 0 : index
    %c0_29 = arith.constant 0 : index
    %52 = vector.load %arg7[%c0_27, %c0_28, %c0_29] : memref<1x256x128xf32, #tpu.memory_space<vmem>>, vector<1x256x128xf32>
    tpu.vector_store %arg7[%c0_27, %c0_28, %c0_29], %51 {strides = array<i32>} : memref<1x256x128xf32, #tpu.memory_space<vmem>>, vector<1x256x128xf32>,
    return
  }
  func.func @transform_0(%arg0: i32) -> (i32, i32, i32) {
    %c0_i32 = arith.constant 0 : i32
    %c0_i32_0 = arith.constant 0 : i32
    %c0_i32_1 = arith.constant 0 : i32
    return %arg0, %c0_i32, %c0_i32_0 : i32, i32, i32
  }
  func.func @transform_1(%arg0: i32) -> (i32, i32, i32) {
    %c0_i32 = arith.constant 0 : i32
    %c0_i32_0 = arith.constant 0 : i32
    %c0_i32_1 = arith.constant 0 : i32
    return %arg0, %c0_i32, %c0_i32_0 : i32, i32, i32
  }
  func.func @transform_2(%arg0: i32) -> (i32, i32, i32) {
    %c0_i32 = arith.constant 0 : i32
    %c0_i32_0 = arith.constant 0 : i32
    %c0_i32_1 = arith.constant 0 : i32
    return %arg0, %c0_i32, %c0_i32_0 : i32, i32, i32
  }
  func.func @transform_3(%arg0: i32) -> (i32, i32, i32) {
    %c0_i32 = arith.constant 0 : i32
    %c0_i32_0 = arith.constant 0 : i32
    %c0_i32_1 = arith.constant 0 : i32
    return %arg0, %c0_i32, %c0_i32_0 : i32, i32, i32
  }
  func.func @transform_4(%arg0: i32) -> (i32, i32) {
    %c0_i32 = arith.constant 0 : i32
    %c0_i32_0 = arith.constant 0 : i32
    %c0_i32_1 = arith.constant 0 : i32
    return %c0_i32, %c0_i32_0 : i32, i32
  }
  func.func @transform_5(%arg0: i32) -> (i32, i32) {
    %c0_i32 = arith.constant 0 : i32
    %c0_i32_0 = arith.constant 0 : i32
    %c0_i32_1 = arith.constant 0 : i32
    return %c0_i32, %c0_i32_0 : i32, i32
  }
  func.func @transform_6(%arg0: i32) -> (i32, i32, i32) {
    %c0_i32 = arith.constant 0 : i32
    %c0_i32_0 = arith.constant 0 : i32
    %c0_i32_1 = arith.constant 0 : i32
    return %arg0, %c0_i32, %c0_i32_0 : i32, i32, i32
  }
}

</mosaic_0001>

<bundles_post_ra>
// kernel: tpu_custom_call.1
= control target key start
LH: loop header
LB: loop body
LE: loop exit
PB: predicated region body
PF: predicated region fallthrough
CT: control target
= control target key end

     0   :  { %s3438_s0 = inlined_call_operand.hbm [shape: f32[2,1,128], index: 0, kind: input, shape index: {}]   ;;  %s3439_s1 = inlined_call_operand.hbm [shape: f32[2,1,128], index: 1, kind: input, shape index: {}]   ;;  %s3440_s2 = inlined_call_operand.hbm [shape: f32[2,256,128], index: 2, kind: input, shape index: {}]   ;;  %s3441_s3 = inlined_call_operand.hbm [shape: f32[2,256,128], index: 3, kind: input, shape index: {}]   ;;  %s3442_s4 = inlined_call_operand.hbm [shape: f32[256,256], index: 4, kind: input, shape index: {}]   ;;  %s3443_s5 = inlined_call_operand.hbm [shape: f32[256,256], index: 5, kind: input, shape index: {}]   ;;  %s3444_s6 = inlined_call_operand.hbm [shape: f32[2,256,128], index: 6, kind: output, shape index: {}]  }
   0x1   :  { %3450 = sst [smem:[#allocation22_spill]] %s3438_s0 }
   0x2   :  { %3451 = sst [smem:[#allocation23_spill]] %s3439_s1 }
   0x3   :  { %3452 = sst [smem:[#allocation24_spill]] %s3442_s4 }
   0x4   :  { %3453 = sst [smem:[#allocation25_spill]] %s3443_s5 }
   0x5   :  { %11 = vsyncpa [#allocation3], 0 }
   0x6   :  { %13 = vsyncpa [#allocation3 + $0x1], 0 }
   0x7   :  { %14 = vsyncpa [#allocation6], 0 }
   0x8   :  { %16 = vsyncpa [#allocation6 + $0x1], 0 }
   0x9   :  { %17 = vsyncpa [#allocation9], 0 }
   0xa   :  { %19 = vsyncpa [#allocation9 + $0x1], 0 }
   0xb   :  { %20 = vsyncpa [#allocation12], 0 }
   0xc   :  { %21 = vsyncpa [#allocation4], 0 }
   0xd   :  { %23 = vsyncpa [#allocation4 + $0x1], 0  ;;  %s2505_s21 = smov 0   ;;  %s2507_s22 = smov 0  }
   0xe   :  { %s2509_s23 = smov 0   ;;  %s2511_s24 = smov 0  }
   0xf LB: > { %3454 = sst [smem:[#allocation20_spill]] %s2455_s23  ;;  %s2526_s25 = sadd.s32 4294967295, %s2459_s24   ;;  %s2459_s24 = sphi %s2511_s24, %s3480_s24   ;;  %s2455_s23 = sphi %s2509_s23, %s3477_s23   ;;  %s2451_s22 = sphi %s2507_s22, %s3479_s22   ;;  %s2447_s21 = sphi %s2505_s21, %s3478_s21  }
  0x10   : > { %s1947_s26 = sadd.s32 4294967294, %s2459_s24   ;;  %p49_p0 = scmp.ne.s32.totalorder %s2451_s22, %s2447_s21 }
  0x11   : > { %p3447_p1 = scmp.eq.s32.totalorder %s2526_s25, 0  ;;  %p193_p2 = scmp.eq.s32.totalorder %s2526_s25, 1 }
  0x12   : > { %p199_p3 = scmp.eq.s32.totalorder %s1947_s26, 1  ;;  %p1948_p5 = scmp.ge.s32.totalorder %s2459_s24, 1 }
  0x13   : > { %p2535_p4 = por %p3447_p1, %p49_p0  ;;  %p206_p7 = scmp.lt.s32.totalorder %s2459_s24, 3 }
  0x14   : > { %p2540_p6 = por %p199_p3, %p49_p0  ;;  %s3457_s4 = sld [smem:[#allocation24_spill]] }
  0x15   : > { %p2548_p8 = pnand %p1948_p5, %p206_p7  ;;  %s2461_s9 = smov [#allocation10]  }
  0x16   : > { %s219_s10 = sshll.u32 %s2461_s9, 4  ;;  %s2562_s12 = sadd.s32 1, %s2459_s24   ;;  %s220_s10 = int_to_ptr.vmem [resolvable:$true] %s219_s10 }
  0x17   : > { %p1990_p9 = pneg %p2548_p8  ;;  %s3445_s13 = smov 256  }
  0x18   : > { %s3446_s14 = smov 16   ;;  %s33_s15 = ssub.s32 %s2459_s24, %s2562_s12 }
  0x19   : > { %p2556_p10 = pnand %p1990_p9, %p3447_p1  ;;  %s36_s16 = sadd.s32 1, %s2455_s23 }
  0x1a   : > { %s217_s7 = sshll.u32 %s3457_s4, 4  ;;  %p34_p12 = scmp.eq.s32.totalorder %s33_s15, 0  ;;  %s218_s7 = int_to_ptr.hbm [resolvable:$true] %s217_s7 }
  0x1b   : > { %1993 = dma.hbm_to_vmem [thread:$0]  (!%p2556_p10), %s218_s7, 8192, %s220_s10, [#allocation9], %s3445_s13, %s3445_s13, %s3446_s14  }
  0x1c   : > { %p43_p13 = scmp.ne.s32.totalorder %s2455_s23, %s2451_s22  ;;  %p44_p0 = scmp.eq.s32.totalorder %s2459_s24, 0 }
  0x1d   : > { %p2016_p3 = scmp.lt.s32.totalorder %s2459_s24, 2  ;;  %s2586_s19 = sand.u32 1, %s2455_s23  }
  0x1e   : > { %s2577_s17 = scalar_select %p34_p12, %s2455_s23, %s36_s16  }
  0x1f   : > { %p45_p5 = por %p44_p0, %p43_p13  ;;  %p2581_p7 = por %p193_p2, %p43_p13 }
  0x20   : > { %3460 = sst [smem:[#allocation21_spill]] %s2577_s17  ;;  %s3448_s20 = sand.u32 1, %s2459_s24  }
  0x21   : > { %p2589_p9 = pnand %p2016_p3, %p45_p5  ;;  %s3463_s1 = sld [smem:[#allocation23_spill]] }
  0x22   : > { %s267_s10 = scalar_lea.vmem [#allocation5], %s2586_s19  ;;  %s2601_s13 = scalar_lea.sflag [#allocation6], %s3448_s20 }
  0x23   : > { %s274_s15 = sshll.u32 %s267_s10, 4  ;;  %p2231_p12 = pneg %p2589_p9  ;;  %s275_s15 = int_to_ptr.vmem [resolvable:$true] %s274_s15 }
  0x27   : > { %s270_s7 = scalar_lea.hbm %s3463_s1, %s2459_s24 }
  0x28   : > { %s272_s9 = sshll.u32 %s270_s7, 4  ;;  %s2234_s7 = scalar_lea.hbm %s3463_s1, 2  ;;  %s273_s9 = int_to_ptr.hbm [resolvable:$true] %s272_s9 }
  0x29   : > { %s2227_s14 = sshra.s32 %s273_s9, 4  ;;  %s2228_s14 = int_to_ptr.hbm [resolvable:$true] %s2227_s14 }
  0x2a   : > { %s2229_s4 = scalar_lea.hbm %s2228_s14, 1  ;;  %p2235_p3 = scmp.lt.s32.totalorder %s2228_s14, %s3463_s1 }
  0x2b   : > { %p2230_p2 = scmp.ne.s32.totalorder %s2228_s14, %s2229_s4  ;;  %p2236_p5 = scmp.lt.s32.totalorder %s2234_s7, %s2229_s4 }
  0x2d   : > { %p2232_p13 = pnand %p2231_p12, %p2230_p2  ;;  %p2237_p11 = por %p2236_p5, %p2235_p3 }
  0x2f   : > { %p2233_p0 = pneg %p2232_p13 }
  0x31   : > { %p2238_p1 = pnand %p2237_p11, %p2233_p0 }
  0x33   : > { %2241 = shalt.err (!%p2238_p1)
}
  0x34   : > { %2003 = dma.hbm_to_vmem [thread:$0]  (!%p2589_p9), %s273_s9, 16, %s275_s15, %s2601_s13  }
  0x35   : > { %s3464_s5 = sld [smem:[#allocation25_spill]]  ;;  %s2464_s17 = smov [#allocation11]  }
  0x36   : > { %s233_s14 = sshll.u32 %s2464_s17, 4  ;;  %s3465_s4 = smov 16   ;;  %s234_s14 = int_to_ptr.vmem [resolvable:$true] %s233_s14 }
  0x37   : > { %s3466_s30 = smov 256   ;;  %s3467_s0 = sld [smem:[#allocation22_spill]] }
  0x38   : > { %s250_s23 = scalar_lea.vmem [#allocation2], %s2586_s19  ;;  %s248_s20 = scalar_lea.sflag [#allocation3], %s2586_s19 }
  0x39   : > { %s257_s9 = sshll.u32 %s250_s23, 4  ;;  %s258_s9 = int_to_ptr.vmem [resolvable:$true] %s257_s9 }
  0x3b   : > { %s231_s29 = sshll.u32 %s3464_s5, 4  ;;  %s232_s29 = int_to_ptr.hbm [resolvable:$true] %s231_s29 }
  0x3c   : > { %1996 = dma.hbm_to_vmem [thread:$0]  (!%p2556_p10), %s232_s29, 8192, %s234_s14, [#allocation12], %s3466_s30, %s3466_s30, %s3465_s4  }
  0x3d   : > { %s253_s1 = scalar_lea.hbm %s3467_s0, %s2459_s24  ;;  %s2294_s17 = scalar_lea.hbm %s3467_s0, 2 }
  0x3e   : > { %s255_s15 = sshll.u32 %s253_s1, 4  ;;  %s256_s15 = int_to_ptr.hbm [resolvable:$true] %s255_s15 }
  0x3f   : > { %s2287_s16 = sshra.s32 %s256_s15, 4  ;;  %s2288_s16 = int_to_ptr.hbm [resolvable:$true] %s2287_s16 }
  0x40   : > { %s2289_s5 = scalar_lea.hbm %s2288_s16, 1  ;;  %p2295_p10 = scmp.lt.s32.totalorder %s2288_s16, %s3467_s0 }
  0x41   : > { %p2290_p1 = scmp.ne.s32.totalorder %s2288_s16, %s2289_s5  ;;  %p2296_p13 = scmp.lt.s32.totalorder %s2294_s17, %s2289_s5 }
  0x43   : > { %p2292_p11 = pnand %p2290_p1, %p2231_p12  ;;  %p2297_p0 = por %p2296_p13, %p2295_p10 }
  0x45   : > { %p2293_p2 = pneg %p2292_p11 }
  0x47   : > { %p2298_p3 = pnand %p2297_p0, %p2293_p2 }
  0x49   : > { %2301 = shalt.err (!%p2298_p3)
}
  0x4a   : > { %2000 = dma.hbm_to_vmem [thread:$0]  (!%p2589_p9), %s256_s15, 16, %s258_s9, %s248_s20  }
  0x4b   : > { %s1969_s1 = sshll.u32 %s2459_s24, 8  ;;  %s3468_s23 = sshll.u32 %s2586_s19, 8 }
  0x4c   : > { %s285_s30 = scalar_lea.vmem [#allocation7], %s3468_s23  ;;  %s290_s29 = scalar_lea.hbm %s3440_s2, %s1969_s1 }
  0x4d   : > { %s293_s7 = sshll.u32 %s285_s30, 4  ;;  %s291_s16 = sshll.u32 %s290_s29, 4  ;;  %s294_s7 = int_to_ptr.vmem [resolvable:$true] %s293_s7  ;;  %s292_s16 = int_to_ptr.hbm [resolvable:$true] %s291_s16 }
  0x4e   : > { %s2317_s5 = sshra.s32 %s292_s16, 4  ;;  %s2324_s20 = scalar_lea.hbm %s3440_s2, 512  ;;  %s2318_s5 = int_to_ptr.hbm [resolvable:$true] %s2317_s5 }
  0x4f   : > { %s2319_s17 = scalar_lea.hbm %s2318_s5, 256  ;;  %p2325_p2 = scmp.lt.s32.totalorder %s2318_s5, %s3440_s2 }
  0x50   : > { %p2320_p5 = scmp.ne.s32.totalorder %s2318_s5, %s2319_s17  ;;  %p2326_p10 = scmp.lt.s32.totalorder %s2324_s20, %s2319_s17 }
  0x52   : > { %p2322_p1 = pnand %p2320_p5, %p2231_p12  ;;  %p2327_p13 = por %p2326_p10, %p2325_p2 }
  0x54   : > { %p2323_p11 = pneg %p2322_p1 }
  0x56   : > { %p2328_p0 = pnand %p2327_p13, %p2323_p11 }
  0x58   : > { %2331 = shalt.err (!%p2328_p0)
}
  0x59   : > { %s2465_s23 = smov 128   ;;  %s2466_s30 = smov 8  }
  0x5a   : > { %2006 = dma.hbm_to_vmem [thread:$0]  (!%p2589_p9), %s292_s16, 4096, %s294_s7, %s2601_s13, %s2465_s23, %s2465_s23, %s2466_s30  }
  0x5b   : > { %s312_s29 = scalar_lea.hbm %s3441_s3, %s1969_s1  ;;  %s3469_s15 = sshll.u32 %s2586_s19, 8 }
  0x5c   : > { %s313_s9 = sshll.u32 %s312_s29, 4  ;;  %s307_s5 = scalar_lea.vmem [#allocation8], %s3469_s15  ;;  %s314_s9 = int_to_ptr.hbm [resolvable:$true] %s313_s9 }
  0x5d   : > { %s315_s17 = sshll.u32 %s307_s5, 4  ;;  %s3470_s20 = sand.u32 1, %s2459_s24   ;;  %s316_s17 = int_to_ptr.vmem [resolvable:$true] %s315_s17 }
  0x5e   : > { %s304_s14 = scalar_lea.sflag [#allocation9], %s3470_s20  ;;  %s2347_s4 = sshra.s32 %s314_s9, 4  ;;  %s2348_s4 = int_to_ptr.hbm [resolvable:$true] %s2347_s4 }
  0x5f   : > { %s2349_s0 = scalar_lea.hbm %s2348_s4, 256  ;;  %s2354_s1 = scalar_lea.hbm %s3441_s3, 512 }
  0x60   : > { %p2350_p3 = scmp.ne.s32.totalorder %s2348_s4, %s2349_s0  ;;  %p2355_p11 = scmp.lt.s32.totalorder %s2348_s4, %s3441_s3 }
  0x61   : > { %p2356_p2 = scmp.lt.s32.totalorder %s2354_s1, %s2349_s0 }
  0x62   : > { %p2352_p5 = pnand %p2350_p3, %p2231_p12 }
  0x63   : > { %p2357_p10 = por %p2356_p2, %p2355_p11 }
  0x64   : > { %p2353_p1 = pneg %p2352_p5 }
  0x66   : > { %p2358_p13 = pnand %p2357_p10, %p2353_p1 }
  0x68   : > { %2361 = shalt.err (!%p2358_p13)
}
  0x69   : > { %2009 = dma.hbm_to_vmem [thread:$0]  (!%p2589_p9), %s314_s9, 4096, %s316_s17, %s304_s14, %s2465_s23, %s2465_s23, %s2466_s30  }
  0x6a   : > { %327 = sbr.rel (%p2548_p8) target bundleno = 1223 (0x4c7), region = 44  ;;  %s2681_s10 = sand.u32 (!%p2548_p8), 1, %s2451_s22  }
  0x6b   : > { %s330_s11 = scalar_lea.sflag (!%p2548_p8), [#allocation3], %s2681_s10  ;;  %s332_s29 = scalar_lea.vmem (!%p2548_p8), [#allocation2], %s2681_s10 }
  0x6f   : > { %2422 = dma.done.wait (%p2535_p4), %s330_s11, 16  }
  0x70   : > { %2424 = vsyncadd (%p2535_p4), %s330_s11, 4294967280  ;;  %s338_s0 = sand.u32 1, %s2526_s25   ;;  %s341_s8 = scalar_lea.vmem [#allocation5], %s2681_s10 }
  0x71   : > { %s339_s26 = scalar_lea.sflag [#allocation6], %s338_s0 }
  0x72   : > { %2426 = dma.done.wait (%p2535_p4), %s339_s26, 4112  }
  0x73   : > { %2428 = vsyncadd (%p2535_p4), %s339_s26, 4294963184  ;;  %s2696_s23 = sshll.u32 %s2681_s10, 8  ;;  %s358_s9 = scalar_lea.sflag [#allocation9], %s338_s0 }
  0x74   : > { %s2699_s30 = scalar_lea.vmem [#allocation7], %s2696_s23  ;;  %s2702_s15 = scalar_lea.vmem [#allocation8], %s2696_s23 }
  0x75   : > { %2430 = dma.done.wait (%p2535_p4), %s358_s9, 4096  }
  0x76   : > { %2432 = vsyncadd (%p2535_p4), %s358_s9, 4294963200  ;;  %p3471_p8 = scmp.eq.s32.totalorder %s2526_s25, 0 }
  0x78   : > { %2434 = dma.done.wait (%p3471_p8), [#allocation9], 8192   ;;  %p3472_p9 = pmov %p3471_p8 }
  0x79   : > { %p3473_p12 = pmov %p3471_p8 }
  0x7a   : > { %2436 = vsyncadd (%p3472_p9), [#allocation9], 4294959104 }
  0x7b   : > { %2438 = dma.done.wait (%p3473_p12), [#allocation12], 8192   ;;  %p3474_p0 = pmov %p3471_p8 }
  0x7c   : > { %v416_v0 = vld [vmem:[%s2699_s30 + $0x10] sm:$0xff]  ;;  %v2717_v1 = vld [vmem:[%s332_s29] ss:$0 sm:$0xff]  ;;  %v414_v2 = vld [vmem:[%s2699_s30] sm:$0xff]  ;;  %vm779_vm0 = vcmask 130112   ;;  %vm783_vm1 = vcmask 195712  }
  0x7d   : > { %2440 = vsyncadd (%p3474_p0), [#allocation12], 4294959104  ;;  %v418_v3 = vld [vmem:[%s2699_s30 + $0x20] sm:$0xff]  ;;  %v485_v4 = vmul.f32 %v2717_v1, %v416_v0  ;;  %v483_v5 = vmul.f32 %v2717_v1, %v414_v2  ;;  %v417_v7 = vld [vmem:[%s2699_s30 + $0x18] sm:$0xff]  ;;  %vm787_vm2 = vcmask 261312   ;;  %vm791_vm3 = vcmask 326912  }
  0x7e   : > { %v487_v6 = vmul.f32 %v2717_v1, %v418_v3  ;;  %v415_v8 = vld [vmem:[%s2699_s30 + $0x8] sm:$0xff]  ;;  %v486_v10 = vmul.f32 %v2717_v1, %v417_v7  ;;  %v421_v13 = vld [vmem:[%s2699_s30 + $0x38] sm:$0xff]  ;;  %v420_v14 = vld [vmem:[%s2699_s30 + $0x30] sm:$0xff]  ;;  %vm795_vm4 = vcmask 392512   ;;  %vm799_vm5 = vcmask 458112   ;;  %s3203_s27 = scalar_lea.vmem [#allocation13], %s2696_s23 }
  0x7f   : > { %519 = vadd.xlane.f32.xlu1 %v485_v4  ;;  %515 = vadd.xlane.f32.xlu0 %v483_v5  ;;  %v419_v9 = vld [vmem:[%s2699_s30 + $0x28] sm:$0xff]  ;;  %v484_v11 = vmul.f32 %v2717_v1, %v415_v8  ;;  %v422_v15 = vld [vmem:[%s2699_s30 + $0x40] sm:$0xff]  ;;  %v490_v16 = vmul.f32 %v2717_v1, %v421_v13  ;;  %v489_v17 = vmul.f32 %v2717_v1, %v420_v14  ;;  %v424_v19 = vld [vmem:[%s2699_s30 + $0x50] sm:$0xff]  ;;  %vm803_vm6 = vcmask 523712   ;;  %s1971_s5 = sshll.u32 %s2526_s25, 8  ;;  %s1794_s4 = sshll.u32 %s3203_s27, 4  ;;  %s1795_s4 = int_to_ptr.vmem [resolvable:$true] %s1794_s4 }
  0x80   : > { %523 = vadd.xlane.f32.xlu2 %v487_v6  ;;  %v488_v12 = vmul.f32 %v2717_v1, %v419_v9  ;;  %v491_v18 = vmul.f32 %v2717_v1, %v422_v15  ;;  %v423_v20 = vld [vmem:[%s2699_s30 + $0x48] sm:$0xff]  ;;  %v425_v21 = vld [vmem:[%s2699_s30 + $0x58] sm:$0xff]  ;;  %v493_v22 = vmul.f32 %v2717_v1, %v424_v19  ;;  %v426_v26 = vld [vmem:[%s2699_s30 + $0x60] sm:$0xff]  ;;  %vm807_vm7 = vcmask 589312   ;;  %s1793_s14 = scalar_lea.hbm %s3444_s6, %s1971_s5  ;;  %s1782_s25 = scalar_lea.sflag [#allocation4], %s2681_s10 }
  0x81   : > { %v492_v23 = vmul.f32 %v2717_v1, %v423_v20  ;;  %v494_v24 = vmul.f32 %v2717_v1, %v425_v21  ;;  %v427_v25 = vld [vmem:[%s2699_s30 + $0x68] sm:$0xff]  ;;  %v428_v27 = vld [vmem:[%s2699_s30 + $0x70] sm:$0xff]  ;;  %v495_v29 = vmul.f32 %v2717_v1, %v426_v26  ;;  %v430_v31 = vld [vmem:[%s2699_s30 + $0x80] sm:$0xff]  ;;  %vm811_vm8 = vcmask 654912   ;;  %s1796_s13 = sshll.u32 %s1793_s14, 4  ;;  %s2397_s11 = scalar_lea.hbm %s3444_s6, 512  ;;  %s1797_s13 = int_to_ptr.hbm [resolvable:$true] %s1796_s13 }
  0x82   : > { %v496_v28 = vmul.f32 %v2717_v1, %v427_v25  ;;  %v497_v30 = vmul.f32 %v2717_v1, %v428_v27  ;;  %v429_v32 = vld [vmem:[%s2699_s30 + $0x78] sm:$0xff]  ;;  %v431_v33 = vld [vmem:[%s2699_s30 + $0x88] sm:$0xff]  ;;  %v499_v34 = vmul.f32 %v2717_v1, %v430_v31  ;;  %v432_v38 = vld [vmem:[%s2699_s30 + $0x90] sm:$0xff]  ;;  %vm815_vm9 = vcmask 720512   ;;  %s2391_s7 = sshra.s32 %s1797_s13, 4  ;;  %s2392_s7 = int_to_ptr.hbm [resolvable:$true] %s2391_s7 }
  0x83   : > { %v498_v35 = vmul.f32 %v2717_v1, %v429_v32  ;;  %v500_v36 = vmul.f32 %v2717_v1, %v431_v33  ;;  %v433_v37 = vld [vmem:[%s2699_s30 + $0x98] sm:$0xff]  ;;  %v434_v39 = vld [vmem:[%s2699_s30 + $0xa0] sm:$0xff]  ;;  %v501_v41 = vmul.f32 %v2717_v1, %v432_v38  ;;  %v436_v43 = vld [vmem:[%s2699_s30 + $0xb0] sm:$0xff]  ;;  %vm819_vm10 = vcmask 786112   ;;  %s2393_s1 = scalar_lea.hbm %s2392_s7, 256  ;;  %p2398_p1 = scmp.lt.s32.totalorder %s2392_s7, %s3444_s6 }
  0x84   : > { %v502_v40 = vmul.f32 %v2717_v1, %v433_v37  ;;  %v503_v42 = vmul.f32 %v2717_v1, %v434_v39  ;;  %v435_v44 = vld [vmem:[%s2699_s30 + $0xa8] sm:$0xff]  ;;  %v437_v45 = vld [vmem:[%s2699_s30 + $0xb8] sm:$0xff]  ;;  %v505_v46 = vmul.f32 %v2717_v1, %v436_v43  ;;  %v438_v50 = vld [vmem:[%s2699_s30 + $0xc0] sm:$0xff]  ;;  %vm823_vm11 = vcmask 851712   ;;  %p2394_p4 = scmp.ne.s32.totalorder %s2392_s7, %s2393_s1  ;;  %p2399_p11 = scmp.lt.s32.totalorder %s2397_s11, %s2393_s1 }
  0x85   : > { %v504_v47 = vmul.f32 %v2717_v1, %v435_v44  ;;  %v506_v48 = vmul.f32 %v2717_v1, %v437_v45  ;;  %v439_v49 = vld [vmem:[%s2699_s30 + $0xc8] sm:$0xff]  ;;  %v440_v51 = vld [vmem:[%s2699_s30 + $0xd0] sm:$0xff]  ;;  %v507_v53 = vmul.f32 %v2717_v1, %v438_v50  ;;  %v442_v55 = vld [vmem:[%s2699_s30 + $0xe0] sm:$0xff]  ;;  %vm827_vm12 = vcmask 917312  }
  0x86   : > { %v508_v52 = vmul.f32 %v2717_v1, %v439_v49  ;;  %v509_v54 = vmul.f32 %v2717_v1, %v440_v51  ;;  %v441_v56 = vld [vmem:[%s2699_s30 + $0xd8] sm:$0xff]  ;;  %v443_v57 = vld [vmem:[%s2699_s30 + $0xe8] sm:$0xff]  ;;  %v511_v58 = vmul.f32 %v2717_v1, %v442_v55  ;;  %v444_v62 = vld [vmem:[%s2699_s30 + $0xf0] sm:$0xff]  ;;  %vm831_vm13 = vcmask 982912   ;;  %p2395_p3 = pnand %p2394_p4, %p2581_p7  ;;  %p2400_p2 = por %p2399_p11, %p2398_p1 }
  0x87   : > { %521 = vadd.xlane.f32.xlu1 %v486_v10  ;;  %517 = vadd.xlane.f32.xlu0 %v484_v11  ;;  %v510_v59 = vmul.f32 %v2717_v1, %v441_v56  ;;  %v512_v60 = vmul.f32 %v2717_v1, %v443_v57  ;;  %v445_v61 = vld [vmem:[%s2699_s30 + $0xf8] sm:$0xff]  ;;  %v446_v0 = vld [vmem:[%s2702_s15] sm:$0xff]  ;;  %v513_v3 = vmul.f32 %v2717_v1, %v444_v62  ;;  %v448_v5 = vld [vmem:[%s2702_s15 + $0x10] sm:$0xff]  ;;  %vm835_vm14 = vcmask 1048512  }
  0x88   : > { %525 = vadd.xlane.f32.xlu2 %v488_v12  ;;  %v2782_v63 = vld [vmem:[%s341_s8] ss:$0 sm:$0xff]  ;;  %v514_v2 = vmul.f32 %v2717_v1, %v445_v61  ;;  %v447_v6 = vld [vmem:[%s2702_s15 + $0x8] sm:$0xff]  ;;  %v450_v11 = vld [vmem:[%s2702_s15 + $0x20] sm:$0xff]  ;;  %vm1192_vm15 = vcmask 1040384   ;;  %p2396_p5 = pneg %p2395_p3 }
  0x89   : > { %v582_v4 = vmul.f32 %v2782_v63, %v446_v0  ;;  %v449_v7 = vld [vmem:[%s2702_s15 + $0x18] sm:$0xff]  ;;  %v584_v8 = vmul.f32 %v2782_v63, %v448_v5  ;;  %v583_v9 = vmul.f32 %v2782_v63, %v447_v6  ;;  %v451_v1 = vld [vmem:[%s2702_s15 + $0x28] sm:$0xff]  ;;  %v452_v12 = vld [vmem:[%s2702_s15 + $0x30] sm:$0xff]  ;;  %v586_v14 = vmul.f32 %v2782_v63, %v450_v11 }
  0x8a   : > { %v585_v10 = vmul.f32 %v2782_v63, %v449_v7  ;;  %v587_v13 = vmul.f32 %v2782_v63, %v451_v1  ;;  %v588_v15 = vmul.f32 %v2782_v63, %v452_v12  ;;  %v453_v19 = vld [vmem:[%s2702_s15 + $0x38] sm:$0xff]  ;;  %v706_v20 = vld [vmem:[#allocation10 + $0xe0] sm:$0xff]  ;;  %v707_v21 = vld [vmem:[#allocation10 + $0xe8] sm:$0xff]  ;;  %p2401_p10 = pnand %p2400_p2, %p2396_p5 }
  0x8b   : > { %v589_v26 = vmul.f32 %v2782_v63, %v453_v19  ;;  %v701_v31 = vld [vmem:[#allocation10 + $0xb8] sm:$0xff]  ;;  %v456_v33 = vld [vmem:[%s2702_s15 + $0x50] sm:$0xff]  ;;  %v695_v43 = vld [vmem:[#allocation10 + $0x88] sm:$0xff] }
  0x8c   : > { %v457_v32 = vld [vmem:[%s2702_s15 + $0x58] sm:$0xff]  ;;  %v696_v37 = vld [vmem:[#allocation10 + $0x90] sm:$0xff]  ;;  %v592_v39 = vmul.f32 %v2782_v63, %v456_v33  ;;  %v690_v50 = vld [vmem:[#allocation10 + $0x60] sm:$0xff] }
  0x8d   : > { %v593_v38 = vmul.f32 %v2782_v63, %v457_v32  ;;  %v692_v44 = vld [vmem:[#allocation10 + $0x70] sm:$0xff]  ;;  %v461_v49 = vld [vmem:[%s2702_s15 + $0x78] sm:$0xff]  ;;  %v686_v61 = vld [vmem:[#allocation10 + $0x40] sm:$0xff] }
  0x8e   : > { %v460_v45 = vld [vmem:[%s2702_s15 + $0x70] sm:$0xff]  ;;  %v687_v0 = vld [vmem:[#allocation10 + $0x48] sm:$0xff]  ;;  %v682_v1 = vld [vmem:[#allocation10 + $0x20] sm:$0xff] }
  0x8f   : > { %529 = vadd.xlane.f32.xlu1 %v490_v16  ;;  %527 = vadd.xlane.f32.xlu0 %v489_v17  ;;  %v708_v16 = vld [vmem:[#allocation10 + $0xf0] sm:$0xff]  ;;  %v709_v17 = vld [vmem:[#allocation10 + $0xf8] sm:$0xff]  ;;  %v596_v55 = vmul.f32 %v2782_v63, %v460_v45  ;;  %v467_v32 = vld [vmem:[%s2702_s15 + $0xa8] sm:$0xff] }
  0x90   : > { %531 = vadd.xlane.f32.xlu2 %v491_v18  ;;  %v454_v18 = vld [vmem:[%s2702_s15 + $0x40] sm:$0xff]  ;;  %870 = vmatpush.msra.mxu0 %v708_v16  ;;  %v688_v57 = vld [vmem:[#allocation10 + $0x50] sm:$0xff]  ;;  %v683_v16 = vld [vmem:[#allocation10 + $0x28] sm:$0xff] }
  0x91   : > { %910 = vmatpush.msra.mxu2 %v709_v17  ;;  %v590_v25 = vmul.f32 %v2782_v63, %v454_v18  ;;  %v684_v5 = vld [vmem:[#allocation10 + $0x30] sm:$0xff] }
  0x92   : > { %871 = vmatpush.msra.mxu0 %v706_v20  ;;  %v464_v7 = vld [vmem:[%s2702_s15 + $0x90] sm:$0xff] }
  0x93   : > { %911 = vmatpush.msra.mxu2 %v707_v21  ;;  %v600_v18 = vmul.f32 %v2782_v63, %v464_v7  ;;  %v680_v21 = vld [vmem:[#allocation10 + $0x10] sm:$0xff] }
  0x97   : > { %535 = vadd.xlane.f32.xlu1 %v493_v22  ;;  %533 = vadd.xlane.f32.xlu0 %v492_v23  ;;  %v455_v22 = vld [vmem:[%s2702_s15 + $0x48] sm:$0xff]  ;;  %v704_v23 = vld [vmem:[#allocation10 + $0xd0] sm:$0xff] }
  0x98   : > { %537 = vadd.xlane.f32.xlu2 %v494_v24  ;;  %v705_v24 = vld [vmem:[#allocation10 + $0xd8] sm:$0xff]  ;;  %v591_v27 = vmul.f32 %v2782_v63, %v455_v22  ;;  %872 = vmatpush.msra.mxu0 %v704_v23 }
  0x99   : > { %912 = vmatpush.msra.mxu2 %v705_v24  ;;  %v681_v24 = vld [vmem:[#allocation10 + $0x18] sm:$0xff] }
  0x9f   : > { %541 = vadd.xlane.f32.xlu1 %v496_v28  ;;  %539 = vadd.xlane.f32.xlu0 %v495_v29  ;;  %v702_v28 = vld [vmem:[#allocation10 + $0xc0] sm:$0xff]  ;;  %v703_v29 = vld [vmem:[#allocation10 + $0xc8] sm:$0xff] }
  0xa0   : > { %543 = vadd.xlane.f32.xlu2 %v497_v30  ;;  %873 = vmatpush.msra.mxu0 %v702_v28  ;;  %v700_v30 = vld [vmem:[#allocation10 + $0xb0] sm:$0xff]  ;;  %v465_v28 = vld [vmem:[%s2702_s15 + $0x98] sm:$0xff] }
  0xa1   : > { %913 = vmatpush.msra.mxu2 %v703_v29  ;;  %v466_v29 = vld [vmem:[%s2702_s15 + $0xa0] sm:$0xff] }
  0xa2   : > { %874 = vmatpush.msra.mxu0 %v700_v30  ;;  %v679_v30 = vld [vmem:[#allocation10 + $0x8] sm:$0xff] }
  0xa3   : > { %914 = vmatpush.msra.mxu2 %v701_v31 }
  0xa7   : > { %547 = vadd.xlane.f32.xlu1 %v499_v34  ;;  %545 = vadd.xlane.f32.xlu0 %v498_v35  ;;  %v698_v34 = vld [vmem:[#allocation10 + $0xa0] sm:$0xff] }
  0xa8   : > { %549 = vadd.xlane.f32.xlu2 %v500_v36  ;;  %v458_v35 = vld [vmem:[%s2702_s15 + $0x60] sm:$0xff]  ;;  %v699_v36 = vld [vmem:[#allocation10 + $0xa8] sm:$0xff]  ;;  %875 = vmatpush.msra.mxu0 %v698_v34 }
  0xa9   : > { %915 = vmatpush.msra.mxu2 %v699_v36 }
  0xaa   : > { %876 = vmatpush.msra.mxu0 %v696_v37 }
  0xaf   : > { %553 = vadd.xlane.f32.xlu1 %v502_v40  ;;  %551 = vadd.xlane.f32.xlu0 %v501_v41  ;;  %v697_v40 = vld [vmem:[#allocation10 + $0x98] sm:$0xff]  ;;  %v594_v41 = vmul.f32 %v2782_v63, %v458_v35 }
  0xb0   : > { %555 = vadd.xlane.f32.xlu2 %v503_v42  ;;  %v694_v42 = vld [vmem:[#allocation10 + $0x80] sm:$0xff]  ;;  %916 = vmatpush.msra.mxu2 %v697_v40  ;;  %v602_v40 = vmul.f32 %v2782_v63, %v466_v29 }
  0xb1   : > { %877 = vmatpush.msra.mxu0 %v694_v42 }
  0xb2   : > { %917 = vmatpush.msra.mxu2 %v695_v43  ;;  %v603_v43 = vmul.f32 %v2782_v63, %v467_v32 }
  0xb3   : > { %878 = vmatpush.msra.mxu0 %v692_v44 }
  0xb5   : > { %879 = vmatpush.msra.mxu0 %v690_v50  ;;  %v741_v50 = vld [vmem:[#allocation10 + $0x1f8] sm:$0xff] }
  0xb6   : > { %930 = vmatpush.msra.mxu3 %v741_v50  ;;  %v724_v50 = vld [vmem:[#allocation10 + $0x170] sm:$0xff] }
  0xb7   : > { %559 = vadd.xlane.f32.xlu1 %v505_v46  ;;  %557 = vadd.xlane.f32.xlu0 %v504_v47  ;;  %v459_v46 = vld [vmem:[%s2702_s15 + $0x68] sm:$0xff]  ;;  %v693_v47 = vld [vmem:[#allocation10 + $0x78] sm:$0xff] }
  0xb8   : > { %561 = vadd.xlane.f32.xlu2 %v506_v48  ;;  %v774_v48 = vlaneseq  ;;  %v595_v56 = vmul.f32 %v2782_v63, %v459_v46  ;;  %918 = vmatpush.msra.mxu2 %v693_v47 }
  0xb9   : > { %880 = vmatpush.msra.mxu0 %v688_v57 }
  0xbb   : > { %881 = vmatpush.msra.mxu0 %v686_v61 }
  0xbd   : > { %882 = vmatpush.msra.mxu0 %v684_v5 }
  0xbf   : > { %565 = vadd.xlane.f32.xlu1 %v508_v52  ;;  %563 = vadd.xlane.f32.xlu0 %v507_v53  ;;  %v691_v53 = vld [vmem:[#allocation10 + $0x68] sm:$0xff] }
  0xc0   : > { %567 = vadd.xlane.f32.xlu2 %v509_v54  ;;  %919 = vmatpush.msra.mxu2 %v691_v53  ;;  %v468_v53 = vld [vmem:[%s2702_s15 + $0xb0] sm:$0xff] }
  0xc1   : > { %883 = vmatpush.msra.mxu0 %v682_v1  ;;  %v604_v5 = vmul.f32 %v2782_v63, %v468_v53  ;;  %v475_v53 = vld [vmem:[%s2702_s15 + $0xe8] sm:$0xff] }
  0xc3   : > { %884 = vmatpush.msra.mxu0 %v680_v21  ;;  %v730_v21 = vld [vmem:[#allocation10 + $0x1a0] sm:$0xff] }
  0xc7   : > { %571 = vadd.xlane.f32.xlu1 %v511_v58  ;;  %569 = vadd.xlane.f32.xlu0 %v510_v59  ;;  %v597_v58 = vmul.f32 %v2782_v63, %v461_v49  ;;  %v2821_v59 = vand.u32 127, %v774_v48  ;;  %v740_v49 = vld [vmem:[#allocation10 + $0x1f0] sm:$0xff] }
  0xc8   : > { %573 = vadd.xlane.f32.xlu2 %v512_v60  ;;  %v689_v60 = vld [vmem:[#allocation10 + $0x58] sm:$0xff]  ;;  %890 = vmatpush.msra.mxu1 %v740_v49 }
  0xc9   : > { %v2824_v62 = vadd.s32 4294967288, %v2821_v59  ;;  %920 = vmatpush.msra.mxu2 %v689_v60  ;;  %v2832_v6 = vadd.s32 4294967272, %v2821_v59  ;;  %v2844_v22 = vadd.s32 4294967264, %v2821_v59  ;;  %v2861_v37 = vadd.s32 4294967240, %v2821_v59 }
  0xca   : > { %v2869_v44 = vadd.s32 4294967232, %v2821_v59  ;;  %v2874_v47 = vadd.s32 4294967224, %v2821_v59  ;;  %v2890_v1 = vadd.s32 4294967208, %v2821_v59  ;;  %v2917_v49 = vadd.s32 4294967176, %v2821_v59 }
  0xcb   : > { %921 = vmatpush.msra.mxu2 %v687_v0 }
  0xcf   : > { %577 = vadd.xlane.f32.xlu1 %v514_v2  ;;  %575 = vadd.xlane.f32.xlu0 %v513_v3  ;;  %v2827_v2 = vadd.s32 4294967280, %v2821_v59  ;;  %v463_v3 = vld [vmem:[%s2702_s15 + $0x88] sm:$0xff] }
  0xd0   : > { %614 = vadd.xlane.f32.xlu2 %v582_v4  ;;  %v462_v4 = vld [vmem:[%s2702_s15 + $0x80] sm:$0xff] }
  0xd7   : > { %618 = vadd.xlane.f32.xlu1 %v584_v8  ;;  %616 = vadd.xlane.f32.xlu0 %v583_v9  ;;  %v685_v8 = vld [vmem:[#allocation10 + $0x38] sm:$0xff] }
  0xd8   : > { %620 = vadd.xlane.f32.xlu2 %v585_v10  ;;  %922 = vmatpush.msra.mxu2 %v685_v8  ;;  %v736_v8 = vld [vmem:[#allocation10 + $0x1d0] sm:$0xff] }
  0xda   : > { %923 = vmatpush.msra.mxu2 %v683_v16  ;;  %v2896_v16 = vadd.s32 4294967200, %v2821_v59 }
  0xdc   : > { %924 = vmatpush.msra.mxu2 %v681_v24  ;;  %v2902_v24 = vadd.s32 4294967192, %v2821_v59 }
  0xde   : > { %925 = vmatpush.msra.mxu2 %v679_v30 }
  0xdf   : > { %624 = vadd.xlane.f32.xlu1 %v587_v13  ;;  %622 = vadd.xlane.f32.xlu0 %v586_v14  ;;  %v599_v14 = vmul.f32 %v2782_v63, %v463_v3 }
  0xe0   : > { %626 = vadd.xlane.f32.xlu2 %v588_v15  ;;  %v598_v15 = vmul.f32 %v2782_v63, %v462_v4 }
  0xe7   : > { %630 = vadd.xlane.f32.xlu1 %v590_v25  ;;  %628 = vadd.xlane.f32.xlu0 %v589_v26  ;;  %v2848_v25 = vadd.s32 4294967256, %v2821_v59  ;;  %v678_v26 = vld [vmem:[#allocation10] sm:$0xff] }
  0xe8   : > { %632 = vadd.xlane.f32.xlu2 %v591_v27  ;;  %v2851_v27 = vadd.s32 4294967248, %v2821_v59  ;;  %885 = vmatpush.msra.mxu0 %v678_v26  ;;  %v473_v26 = vld [vmem:[%s2702_s15 + $0xd8] sm:$0xff] }
  0xef   : > { %636 = vadd.xlane.f32.xlu1 %v593_v38  ;;  %634 = vadd.xlane.f32.xlu0 %v592_v39  ;;  %v601_v39 = vmul.f32 %v2782_v63, %v465_v28  ;;  %v731_v28 = vld [vmem:[#allocation10 + $0x1a8] sm:$0xff] }
  0xf0   : > { %638 = vadd.xlane.f32.xlu2 %v594_v41 }
  0xf2   : > { %v520_v51 = vpop.xlane.xlu1 %519  ;;  %v516_v52 = vpop.xlane.xlu0 %515 }
  0xf3   : > { %v2815_v54 = vpop.xlane.xlu2 %523  ;;  %v776_v11 = vperm.slane %v516_v52, %v2821_v59  ;;  %v782_v17 = vperm.slane %v520_v51, %v2827_v2  ;;  %v738_v51 = vld [vmem:[#allocation10 + $0x1e0] sm:$0xff] }
  0xf4   : > { %v790_v33 = vperm.slane %v2815_v54, %v2844_v22  ;;  %v469_v54 = vld [vmem:[%s2702_s15 + $0xb8] sm:$0xff]  ;;  %891 = vmatpush.msra.mxu1 %v738_v51 }
  0xf5   : > { %v605_v7 = vmul.f32 %v2782_v63, %v469_v54  ;;  %v725_v54 = vld [vmem:[#allocation10 + $0x178] sm:$0xff] }
  0xf6   : > { %892 = vmatpush.msra.mxu1 %v736_v8 }
  0xf7   : > { %642 = vadd.xlane.f32.xlu1 %v596_v55  ;;  %640 = vadd.xlane.f32.xlu0 %v595_v56  ;;  %v739_v55 = vld [vmem:[#allocation10 + $0x1e8] sm:$0xff]  ;;  %v470_v56 = vld [vmem:[%s2702_s15 + $0xc0] sm:$0xff] }
  0xf8   : > { %644 = vadd.xlane.f32.xlu2 %v597_v58  ;;  %v2882_v58 = vadd.s32 4294967216, %v2821_v59  ;;  %931 = vmatpush.msra.mxu3 %v739_v55 }
  0xfa   : > { %v522_v9 = vpop.xlane.xlu1 %521  ;;  %v518_v10 = vpop.xlane.xlu0 %517 }
  0xfb   : > { %v778_v12 = vperm.slane %v518_v10, %v2824_v62  ;;  %v526_v13 = vpop.xlane.xlu2 %525  ;;  %v786_v19 = vperm.slane %v522_v9, %v2832_v6  ;;  %v737_v9 = vld [vmem:[#allocation10 + $0x1d8] sm:$0xff]  ;;  %v606_v10 = vmul.f32 %v2782_v63, %v470_v56  ;;  %v476_v56 = vld [vmem:[%s2702_s15 + $0xf0] sm:$0xff] }
  0xfc   : > { %v794_v36 = vperm.slane %v526_v13, %v2848_v25  ;;  %932 = vmatpush.msra.mxu3 %v737_v9  ;;  %v612_v9 = vmul.f32 %v2782_v63, %v476_v56 }
  0xfd   : > { %v780_v20 = vsel %vm779_vm0, %v778_v12, %v776_v11  ;;  %v734_v11 = vld [vmem:[#allocation10 + $0x1c0] sm:$0xff]  ;;  %v735_v12 = vld [vmem:[#allocation10 + $0x1c8] sm:$0xff] }
  0xfe   : > { %v784_v23 = vsel %vm783_vm1, %v782_v17, %v780_v20  ;;  %893 = vmatpush.msra.mxu1 %v734_v11  ;;  %v732_v17 = vld [vmem:[#allocation10 + $0x1b0] sm:$0xff]  ;;  %933 = vmatpush.msra.mxu3 %v735_v12  ;;  %v721_v12 = vld [vmem:[#allocation10 + $0x158] sm:$0xff] }
  0xff   : > { %648 = vadd.xlane.f32.xlu1 %v599_v14  ;;  %646 = vadd.xlane.f32.xlu0 %v598_v15  ;;  %v788_v31 = vsel %vm787_vm2, %v786_v19, %v784_v23  ;;  %v471_v19 = vld [vmem:[%s2702_s15 + $0xc8] sm:$0xff]  ;;  %v472_v20 = vld [vmem:[%s2702_s15 + $0xd0] sm:$0xff] }
 0x100   : > { %650 = vadd.xlane.f32.xlu2 %v600_v18  ;;  %v792_v41 = vsel %vm791_vm3, %v790_v33, %v788_v31  ;;  %v733_v18 = vld [vmem:[#allocation10 + $0x1b8] sm:$0xff]  ;;  %894 = vmatpush.msra.mxu1 %v732_v17  ;;  %v720_v11 = vld [vmem:[#allocation10 + $0x150] sm:$0xff] }
 0x101   : > { %v796_v45 = vsel %vm795_vm4, %v794_v36, %v792_v41  ;;  %934 = vmatpush.msra.mxu3 %v733_v18  ;;  %v728_v36 = vld [vmem:[#allocation10 + $0x190] sm:$0xff] }
 0x102   : > { %v530_v34 = vpop.xlane.xlu1 %529  ;;  %v528_v35 = vpop.xlane.xlu0 %527  ;;  %895 = vmatpush.msra.mxu1 %v730_v21  ;;  %v716_v17 = vld [vmem:[#allocation10 + $0x130] sm:$0xff] }
 0x103   : > { %v532_v38 = vpop.xlane.xlu2 %531  ;;  %v798_v42 = vperm.slane %v528_v35, %v2851_v27  ;;  %v802_v46 = vperm.slane %v530_v34, %v2861_v37  ;;  %v607_v34 = vmul.f32 %v2782_v63, %v471_v19  ;;  %v608_v35 = vmul.f32 %v2782_v63, %v472_v20  ;;  %935 = vmatpush.msra.mxu3 %v731_v28 }
 0x104   : > { %v806_v57 = vperm.slane %v532_v38, %v2869_v44  ;;  %v729_v38 = vld [vmem:[#allocation10 + $0x198] sm:$0xff]  ;;  %896 = vmatpush.msra.mxu1 %v728_v36 }
 0x105   : > { %v800_v52 = vsel %vm799_vm5, %v798_v42, %v796_v45  ;;  %936 = vmatpush.msra.mxu3 %v729_v38  ;;  %v711_v38 = vld [vmem:[#allocation10 + $0x108] sm:$0xff] }
 0x106   : > { %v804_v0 = vsel %vm803_vm6, %v802_v46, %v800_v52  ;;  %v727_v46 = vld [vmem:[#allocation10 + $0x188] sm:$0xff]  ;;  %v474_v52 = vld [vmem:[%s2702_s15 + $0xe0] sm:$0xff] }
 0x107   : > { %652 = vadd.xlane.f32.xlu0 %v601_v39  ;;  %654 = vadd.xlane.f32.xlu1 %v602_v40  ;;  %v808_v13 = vsel %vm807_vm7, %v806_v57, %v804_v0  ;;  %v2910_v39 = vadd.s32 4294967184, %v2821_v59  ;;  %v609_v40 = vmul.f32 %v2782_v63, %v473_v26  ;;  %v722_v57 = vld [vmem:[#allocation10 + $0x160] sm:$0xff]  ;;  %v723_v0 = vld [vmem:[#allocation10 + $0x168] sm:$0xff] }
 0x108   : > { %656 = vadd.xlane.f32.xlu2 %v603_v43  ;;  %v726_v43 = vld [vmem:[#allocation10 + $0x180] sm:$0xff]  ;;  %937 = vmatpush.msra.mxu3 %v727_v46 }
 0x109   : > { %897 = vmatpush.msra.mxu1 %v726_v43 }
 0x10a   : > { %v536_v60 = vpop.xlane.xlu1 %535  ;;  %v534_v61 = vpop.xlane.xlu0 %533  ;;  %938 = vmatpush.msra.mxu3 %v725_v54 }
 0x10b   : > { %v810_v3 = vperm.slane %v534_v61, %v2874_v47  ;;  %v538_v4 = vpop.xlane.xlu2 %537  ;;  %v814_v14 = vperm.slane %v536_v60, %v2882_v58  ;;  %898 = vmatpush.msra.mxu1 %v724_v50 }
 0x10c   : > { %v818_v23 = vperm.slane %v538_v4, %v2890_v1  ;;  %939 = vmatpush.msra.mxu3 %v723_v0 }
 0x10d   : > { %v812_v15 = vsel %vm811_vm8, %v810_v3, %v808_v13  ;;  %899 = vmatpush.msra.mxu1 %v722_v57  ;;  %v718_v13 = vld [vmem:[#allocation10 + $0x140] sm:$0xff] }
 0x10e   : > { %v816_v29 = vsel %vm815_vm9, %v814_v14, %v812_v15  ;;  %v477_v14 = vld [vmem:[%s2702_s15 + $0xf8] sm:$0xff]  ;;  %v719_v15 = vld [vmem:[#allocation10 + $0x148] sm:$0xff]  ;;  %940 = vmatpush.msra.mxu3 %v721_v12 }
 0x10f   : > { %658 = vadd.xlane.f32.xlu0 %v604_v5  ;;  %660 = vadd.xlane.f32.xlu1 %v605_v7  ;;  %v820_v41 = vsel %vm819_vm10, %v818_v23, %v816_v29  ;;  %v610_v5 = vmul.f32 %v2782_v63, %v474_v52  ;;  %v611_v7 = vmul.f32 %v2782_v63, %v475_v53  ;;  %v717_v23 = vld [vmem:[#allocation10 + $0x138] sm:$0xff]  ;;  %v714_v29 = vld [vmem:[#allocation10 + $0x120] sm:$0xff]  ;;  %v980_v52 = vld [vmem:[#allocation11 + $0xf0] sm:$0xff] }
 0x110   : > { %662 = vadd.xlane.f32.xlu2 %v606_v10  ;;  %900 = vmatpush.msra.mxu1 %v720_v11  ;;  %v613_v28 = vmul.f32 %v2782_v63, %v477_v14  ;;  %v981_v53 = vld [vmem:[#allocation11 + $0xf8] sm:$0xff]  ;;  %v975_v11 = vld [vmem:[#allocation11 + $0xc8] sm:$0xff] }
 0x111   : > { %941 = vmatpush.msra.mxu3 %v719_v15  ;;  %1110 = vmatpush.msrb.mxu0 %v980_v52  ;;  %v973_v14 = vld [vmem:[#allocation11 + $0xb8] sm:$0xff]  ;;  %v960_v52 = vld [vmem:[#allocation11 + $0x50] sm:$0xff] }
 0x112   : > { %v542_v30 = vpop.xlane.xlu1 %541  ;;  %v540_v31 = vpop.xlane.xlu0 %539  ;;  %901 = vmatpush.msra.mxu1 %v718_v13  ;;  %1150 = vmatpush.msrb.mxu2 %v981_v53  ;;  %v972_v13 = vld [vmem:[#allocation11 + $0xb0] sm:$0xff]  ;;  %v961_v53 = vld [vmem:[#allocation11 + $0x58] sm:$0xff] }
 0x113   : > { %v822_v32 = vperm.slane %v540_v31, %v2896_v16  ;;  %v544_v33 = vpop.xlane.xlu2 %543  ;;  %v826_v42 = vperm.slane %v542_v30, %v2902_v24  ;;  %v715_v30 = vld [vmem:[#allocation10 + $0x128] sm:$0xff]  ;;  %942 = vmatpush.msra.mxu3 %v717_v23 }
 0x114   : > { %v830_v51 = vperm.slane %v544_v33, %v2910_v39  ;;  %902 = vmatpush.msra.mxu1 %v716_v17 }
 0x115   : > { %v824_v45 = vsel %vm823_vm11, %v822_v32, %v820_v41  ;;  %v712_v32 = vld [vmem:[#allocation10 + $0x110] sm:$0xff]  ;;  %943 = vmatpush.msra.mxu3 %v715_v30 }
 0x116   : > { %v828_v55 = vsel %vm827_vm12, %v826_v42, %v824_v45  ;;  %903 = vmatpush.msra.mxu1 %v714_v29  ;;  %v969_v29 = vld [vmem:[#allocation11 + $0x98] sm:$0xff] }
 0x117   : > { %664 = vadd.xlane.f32.xlu0 %v607_v34  ;;  %666 = vadd.xlane.f32.xlu1 %v608_v35  ;;  %v832_v8 = vsel %vm831_vm13, %v830_v51, %v828_v55  ;;  %v713_v34 = vld [vmem:[#allocation10 + $0x118] sm:$0xff]  ;;  %v710_v35 = vld [vmem:[#allocation10 + $0x100] sm:$0xff] }
 0x118   : > { %668 = vadd.xlane.f32.xlu2 %v609_v40  ;;  %904 = vmatpush.msra.mxu1 %v712_v32 }
 0x119   : > { %944 = vmatpush.msra.mxu3 %v713_v34  ;;  %v967_v34 = vld [vmem:[#allocation11 + $0x88] sm:$0xff] }
 0x11a   : > { %v548_v60 = vpop.xlane.xlu1 %547  ;;  %v546_v61 = vpop.xlane.xlu0 %545  ;;  %905 = vmatpush.msra.mxu1 %v710_v35  ;;  %v964_v35 = vld [vmem:[#allocation11 + $0x70] sm:$0xff] }
 0x11b   : > { %v834_v3 = vperm.slane %v546_v61, %v2917_v49  ;;  %v550_v4 = vpop.xlane.xlu2 %549  ;;  %v837_v18 = vperm.slane %v548_v60, %v2821_v59  ;;  %945 = vmatpush.msra.mxu3 %v711_v38  ;;  %v978_v60 = vld [vmem:[#allocation11 + $0xe0] sm:$0xff]  ;;  %v979_v61 = vld [vmem:[#allocation11 + $0xe8] sm:$0xff] }
 0x11c   : > { %v838_v19 = vperm.slane %v550_v4, %v2824_v62  ;;  %1111 = vmatpush.msrb.mxu0 %v978_v60  ;;  %1151 = vmatpush.msrb.mxu2 %v979_v61  ;;  %v956_v60 = vld [vmem:[#allocation11 + $0x30] sm:$0xff]  ;;  %v957_v61 = vld [vmem:[#allocation11 + $0x38] sm:$0xff] }
 0x11d   : > { %v836_v10 = vsel %vm835_vm14, %v834_v3, %v832_v8 }
 0x11e   : > { %886 = vmatmul.f32.vlgmr.msra.gmra.mxu0 %v836_v10  ;;  %926 = vmatmul.f32.vlgmr.msra.gmra.mxu2 %v836_v10  ;;  %v839_v33 = vsel %vm779_vm0, %v838_v19, %v837_v18  ;;  %v974_v10 = vld [vmem:[#allocation11 + $0xc0] sm:$0xff] }
 0x11f   : > { %670 = vadd.xlane.f32.xlu0 %v610_v5  ;;  %672 = vadd.xlane.f32.xlu1 %v611_v7  ;;  %v976_v5 = vld [vmem:[#allocation11 + $0xd0] sm:$0xff]  ;;  %v977_v7 = vld [vmem:[#allocation11 + $0xd8] sm:$0xff] }
 0x120   : > { %674 = vadd.xlane.f32.xlu2 %v612_v9  ;;  %1112 = vmatpush.msrb.mxu0 %v976_v5  ;;  %v955_v5 = vld [vmem:[#allocation11 + $0x28] sm:$0xff] }
 0x121   : > { %1152 = vmatpush.msrb.mxu2 %v977_v7 }
 0x122   : > { %v554_v20 = vpop.xlane.xlu1 %553  ;;  %v552_v21 = vpop.xlane.xlu0 %551  ;;  %1113 = vmatpush.msrb.mxu0 %v974_v10 }
 0x123   : > { %v556_v26 = vpop.xlane.xlu2 %555  ;;  %v840_v31 = vperm.slane %v552_v21, %v2827_v2  ;;  %v842_v36 = vperm.slane %v554_v20, %v2832_v6  ;;  %1153 = vmatpush.msrb.mxu2 %v975_v11  ;;  %v970_v20 = vld [vmem:[#allocation11 + $0xa0] sm:$0xff]  ;;  %v971_v21 = vld [vmem:[#allocation11 + $0xa8] sm:$0xff] }
 0x124   : > { %v844_v42 = vperm.slane %v556_v26, %v2844_v22  ;;  %1114 = vmatpush.msrb.mxu0 %v972_v13  ;;  %v951_v13 = vld [vmem:[#allocation11 + $0x8] sm:$0xff] }
 0x125   : > { %v841_v63 = vsel %vm783_vm1, %v840_v31, %v839_v33  ;;  %1154 = vmatpush.msrb.mxu2 %v973_v14  ;;  %v966_v33 = vld [vmem:[#allocation11 + $0x80] sm:$0xff] }
 0x126   : > { %v843_v45 = vsel %vm787_vm2, %v842_v36, %v841_v63  ;;  %1115 = vmatpush.msrb.mxu0 %v970_v20  ;;  %v965_v36 = vld [vmem:[#allocation11 + $0x78] sm:$0xff] }
 0x127   : > { %676 = vadd.xlane.f32.xlu0 %v613_v28  ;;  %v845_v50 = vsel %vm791_vm3, %v844_v42, %v843_v45  ;;  %1155 = vmatpush.msrb.mxu2 %v971_v21  ;;  %v968_v28 = vld [vmem:[#allocation11 + $0x90] sm:$0xff]  ;;  %v962_v42 = vld [vmem:[#allocation11 + $0x60] sm:$0xff] }
 0x128   : > { %1116 = vmatpush.msrb.mxu0 %v968_v28 }
 0x129   : > { %1156 = vmatpush.msrb.mxu2 %v969_v29 }
 0x12a   : > { %v560_v40 = vpop.xlane.xlu1 %559  ;;  %v558_v41 = vpop.xlane.xlu0 %557  ;;  %1117 = vmatpush.msrb.mxu0 %v966_v33 }
 0x12b   : > { %v562_v43 = vpop.xlane.xlu2 %561  ;;  %v846_v46 = vperm.slane %v558_v41, %v2848_v25  ;;  %v848_v51 = vperm.slane %v560_v40, %v2851_v27  ;;  %1157 = vmatpush.msrb.mxu2 %v967_v34 }
 0x12c   : > { %v850_v55 = vperm.slane %v562_v43, %v2861_v37  ;;  %1118 = vmatpush.msrb.mxu0 %v964_v35  ;;  %v963_v43 = vld [vmem:[#allocation11 + $0x68] sm:$0xff] }
 0x12d   : > { %v847_v54 = vsel %vm795_vm4, %v846_v46, %v845_v50  ;;  %1158 = vmatpush.msrb.mxu2 %v965_v36 }
 0x12e   : > { %v849_v0 = vsel %vm799_vm5, %v848_v51, %v847_v54  ;;  %1119 = vmatpush.msrb.mxu0 %v962_v42  ;;  %v1010_v42 = vld [vmem:[#allocation11 + $0x1e0] sm:$0xff] }
 0x12f   : > { %v851_v8 = vsel %vm803_vm6, %v850_v55, %v849_v0  ;;  %1159 = vmatpush.msrb.mxu2 %v963_v43  ;;  %v1011_v43 = vld [vmem:[#allocation11 + $0x1e8] sm:$0xff] }
 0x130   : > { %1120 = vmatpush.msrb.mxu0 %v960_v52  ;;  %v1008_v52 = vld [vmem:[#allocation11 + $0x1d0] sm:$0xff] }
 0x131   : > { %1160 = vmatpush.msrb.mxu2 %v961_v53  ;;  %v1009_v53 = vld [vmem:[#allocation11 + $0x1d8] sm:$0xff] }
 0x132   : > { %v566_v56 = vpop.xlane.xlu1 %565  ;;  %v564_v57 = vpop.xlane.xlu0 %563 }
 0x133   : > { %v852_v3 = vperm.slane %v564_v57, %v2869_v44  ;;  %v568_v4 = vpop.xlane.xlu2 %567  ;;  %v854_v9 = vperm.slane %v566_v56, %v2874_v47  ;;  %v958_v56 = vld [vmem:[#allocation11 + $0x40] sm:$0xff]  ;;  %v959_v57 = vld [vmem:[#allocation11 + $0x48] sm:$0xff] }
 0x134   : > { %v856_v15 = vperm.slane %v568_v4, %v2882_v58  ;;  %1121 = vmatpush.msrb.mxu0 %v958_v56  ;;  %1161 = vmatpush.msrb.mxu2 %v959_v57  ;;  %v954_v4 = vld [vmem:[#allocation11 + $0x20] sm:$0xff]  ;;  %v1007_v57 = vld [vmem:[#allocation11 + $0x1c8] sm:$0xff] }
 0x135   : > { %v853_v12 = vsel %vm807_vm7, %v852_v3, %v851_v8  ;;  %v952_v8 = vld [vmem:[#allocation11 + $0x10] sm:$0xff]  ;;  %v1006_v56 = vld [vmem:[#allocation11 + $0x1c0] sm:$0xff] }
 0x136   : > { %v855_v17 = vsel %vm811_vm8, %v854_v9, %v853_v12  ;;  %1122 = vmatpush.msrb.mxu0 %v956_v60  ;;  %1162 = vmatpush.msrb.mxu2 %v957_v61  ;;  %v953_v9 = vld [vmem:[#allocation11 + $0x18] sm:$0xff]  ;;  %v950_v12 = vld [vmem:[#allocation11] sm:$0xff] }
 0x137   : > { %v857_v30 = vsel %vm815_vm9, %v856_v15, %v855_v17 }
 0x138   : > { %1123 = vmatpush.msrb.mxu0 %v954_v4  ;;  %1163 = vmatpush.msrb.mxu2 %v955_v5  ;;  %v1005_v4 = vld [vmem:[#allocation11 + $0x1b8] sm:$0xff]  ;;  %v1002_v5 = vld [vmem:[#allocation11 + $0x1a0] sm:$0xff] }
 0x13a   : > { %v572_v18 = vpop.xlane.xlu1 %571  ;;  %v570_v19 = vpop.xlane.xlu0 %569  ;;  %1124 = vmatpush.msrb.mxu0 %v952_v8  ;;  %1164 = vmatpush.msrb.mxu2 %v953_v9 }
 0x13b   : > { %v858_v23 = vperm.slane %v570_v19, %v2890_v1  ;;  %v574_v26 = vpop.xlane.xlu2 %573  ;;  %v860_v31 = vperm.slane %v572_v18, %v2896_v16 }
 0x13c   : > { %v862_v38 = vperm.slane %v574_v26, %v2902_v24  ;;  %1125 = vmatpush.msrb.mxu0 %v950_v12  ;;  %1165 = vmatpush.msrb.mxu2 %v951_v13  ;;  %v1000_v12 = vld [vmem:[#allocation11 + $0x190] sm:$0xff]  ;;  %v1001_v13 = vld [vmem:[#allocation11 + $0x198] sm:$0xff] }
 0x13d   : > { %v859_v32 = vsel %vm819_vm10, %v858_v23, %v857_v30 }
 0x13e   : > { %v861_v63 = vsel %vm823_vm11, %v860_v31, %v859_v32 }
 0x13f   : > { %v863_v51 = vsel %vm827_vm12, %v862_v38, %v861_v63  ;;  %v1012_v63 = vld [vmem:[#allocation11 + $0x1f0] sm:$0xff] }
 0x140   : > { %1130 = vmatpush.msrb.mxu1 %v1012_v63  ;;  %v990_v63 = vld [vmem:[#allocation11 + $0x140] sm:$0xff] }
 0x142   : > { %v578_v40 = vpop.xlane.xlu1 %577  ;;  %v576_v41 = vpop.xlane.xlu0 %575  ;;  %1131 = vmatpush.msrb.mxu1 %v1010_v42  ;;  %v989_v42 = vld [vmem:[#allocation11 + $0x138] sm:$0xff] }
 0x143   : > { %v866_v45 = vperm.slane %v578_v40, %v2917_v49  ;;  %v864_v46 = vperm.slane %v576_v41, %v2910_v39  ;;  %v615_v50 = vpop.xlane.xlu2 %614  ;;  %v1013_v40 = vld [vmem:[#allocation11 + $0x1f8] sm:$0xff] }
 0x144   : > { %v1046_v10 = vperm.slane %v615_v50, %v2821_v59  ;;  %1170 = vmatpush.msrb.mxu3 %v1013_v40  ;;  %1132 = vmatpush.msrb.mxu1 %v1008_v52  ;;  %v991_v40 = vld [vmem:[#allocation11 + $0x148] sm:$0xff] }
 0x145   : > { %v865_v54 = vsel %vm831_vm13, %v864_v46, %v863_v51 }
 0x146   : > { %v867_v55 = vsel %vm835_vm14, %v866_v45, %v865_v54  ;;  %1171 = vmatpush.msrb.mxu3 %v1011_v43  ;;  %1133 = vmatpush.msrb.mxu1 %v1006_v56  ;;  %v986_v43 = vld [vmem:[#allocation11 + $0x120] sm:$0xff] }
 0x147   : > { %906 = vmatmul.f32.vlgmr.msra.gmra.mxu1 %v867_v55  ;;  %946 = vmatmul.f32.vlgmr.msra.gmra.mxu3 %v867_v55  ;;  %v982_v56 = vld [vmem:[#allocation11 + $0x100] sm:$0xff] }
 0x148   : > { %1172 = vmatpush.msrb.mxu3 %v1009_v53  ;;  %v984_v53 = vld [vmem:[#allocation11 + $0x110] sm:$0xff] }
 0x14a   : > { %v619_v0 = vpop.xlane.xlu1 %618  ;;  %v617_v3 = vpop.xlane.xlu0 %616  ;;  %1173 = vmatpush.msrb.mxu3 %v1007_v57  ;;  %v983_v57 = vld [vmem:[#allocation11 + $0x108] sm:$0xff] }
 0x14b   : > { %v621_v7 = vpop.xlane.xlu2 %620  ;;  %v1047_v11 = vperm.slane %v617_v3, %v2824_v62  ;;  %v1049_v14 = vperm.slane %v619_v0, %v2827_v2  ;;  %v1004_v3 = vld [vmem:[#allocation11 + $0x1b0] sm:$0xff] }
 0x14c   : > { %v1051_v19 = vperm.slane %v621_v7, %v2832_v6  ;;  %1134 = vmatpush.msrb.mxu1 %v1004_v3  ;;  %1174 = vmatpush.msrb.mxu3 %v1005_v4  ;;  %v1003_v7 = vld [vmem:[#allocation11 + $0x1a8] sm:$0xff] }
 0x14d   : > { %v1048_v15 = vsel %vm779_vm0, %v1047_v11, %v1046_v10 }
 0x14e   : > { %v1050_v21 = vsel %vm783_vm1, %v1049_v14, %v1048_v15  ;;  %1135 = vmatpush.msrb.mxu1 %v1002_v5  ;;  %1175 = vmatpush.msrb.mxu3 %v1003_v7 }
 0x14f   : > { %v1052_v26 = vsel %vm787_vm2, %v1051_v19, %v1050_v21  ;;  %v999_v21 = vld [vmem:[#allocation11 + $0x188] sm:$0xff] }
 0x150   : > { %1136 = vmatpush.msrb.mxu1 %v1000_v12  ;;  %1176 = vmatpush.msrb.mxu3 %v1001_v13 }
 0x152   : > { %v625_v17 = vpop.xlane.xlu1 %624  ;;  %v623_v18 = vpop.xlane.xlu0 %622  ;;  %1177 = vmatpush.msrb.mxu3 %v999_v21 }
 0x153   : > { %v627_v20 = vpop.xlane.xlu2 %626  ;;  %v1053_v23 = vperm.slane %v623_v18, %v2844_v22  ;;  %v1055_v28 = vperm.slane %v625_v17, %v2848_v25 }
 0x154   : > { %v1057_v30 = vperm.slane %v627_v20, %v2851_v27  ;;  %v998_v20 = vld [vmem:[#allocation11 + $0x180] sm:$0xff] }
 0x155   : > { %v1054_v29 = vsel %vm791_vm3, %v1053_v23, %v1052_v26  ;;  %1137 = vmatpush.msrb.mxu1 %v998_v20 }
 0x156   : > { %v1056_v33 = vsel %vm795_vm4, %v1055_v28, %v1054_v29  ;;  %v996_v28 = vld [vmem:[#allocation11 + $0x170] sm:$0xff]  ;;  %v997_v29 = vld [vmem:[#allocation11 + $0x178] sm:$0xff] }
 0x157   : > { %v1058_v36 = vsel %vm799_vm5, %v1057_v30, %v1056_v33  ;;  %1138 = vmatpush.msrb.mxu1 %v996_v28  ;;  %1178 = vmatpush.msrb.mxu3 %v997_v29 }
 0x15a   : > { %v631_v31 = vpop.xlane.xlu1 %630  ;;  %v629_v32 = vpop.xlane.xlu0 %628 }
 0x15b   : > { %v1059_v34 = vperm.slane %v629_v32, %v2861_v37  ;;  %v633_v35 = vpop.xlane.xlu2 %632  ;;  %v1061_v38 = vperm.slane %v631_v31, %v2869_v44  ;;  %v994_v31 = vld [vmem:[#allocation11 + $0x160] sm:$0xff]  ;;  %v995_v32 = vld [vmem:[#allocation11 + $0x168] sm:$0xff] }
 0x15c   : > { %v1063_v45 = vperm.slane %v633_v35, %v2874_v47  ;;  %1139 = vmatpush.msrb.mxu1 %v994_v31  ;;  %1179 = vmatpush.msrb.mxu3 %v995_v32  ;;  %v992_v35 = vld [vmem:[#allocation11 + $0x150] sm:$0xff] }
 0x15d   : > { %v1060_v41 = vsel %vm803_vm6, %v1059_v34, %v1058_v36  ;;  %v993_v36 = vld [vmem:[#allocation11 + $0x158] sm:$0xff] }
 0x15e   : > { %v1062_v46 = vsel %vm807_vm7, %v1061_v38, %v1060_v41  ;;  %1140 = vmatpush.msrb.mxu1 %v992_v35  ;;  %1180 = vmatpush.msrb.mxu3 %v993_v36  ;;  %v988_v41 = vld [vmem:[#allocation11 + $0x130] sm:$0xff] }
 0x15f   : > { %v1064_v60 = vsel %vm811_vm8, %v1063_v45, %v1062_v46  ;;  %v987_v45 = vld [vmem:[#allocation11 + $0x128] sm:$0xff] }
 0x160   : > { %1141 = vmatpush.msrb.mxu1 %v990_v63  ;;  %1181 = vmatpush.msrb.mxu3 %v991_v40 }
 0x162   : > { %v637_v50 = vpop.xlane.xlu1 %636  ;;  %v635_v51 = vpop.xlane.xlu0 %634  ;;  %1142 = vmatpush.msrb.mxu1 %v988_v41  ;;  %1182 = vmatpush.msrb.mxu3 %v989_v42 }
 0x163   : > { %v1065_v54 = vperm.slane %v635_v51, %v2882_v58  ;;  %v639_v55 = vpop.xlane.xlu2 %638  ;;  %v1067_v61 = vperm.slane %v637_v50, %v2890_v1 }
 0x164   : > { %v1069_v8 = vperm.slane %v639_v55, %v2896_v16  ;;  %1143 = vmatpush.msrb.mxu1 %v986_v43  ;;  %1183 = vmatpush.msrb.mxu3 %v987_v45 }
 0x165   : > { %v1066_v0 = vsel %vm815_vm9, %v1065_v54, %v1064_v60  ;;  %v985_v54 = vld [vmem:[#allocation11 + $0x118] sm:$0xff] }
 0x166   : > { %v1068_v9 = vsel %vm819_vm10, %v1067_v61, %v1066_v0  ;;  %1144 = vmatpush.msrb.mxu1 %v984_v53  ;;  %1184 = vmatpush.msrb.mxu3 %v985_v54 }
 0x167   : > { %v1070_v18 = vsel %vm823_vm11, %v1069_v8, %v1068_v9 }
 0x168   : > { %1145 = vmatpush.msrb.mxu1 %v982_v56  ;;  %1185 = vmatpush.msrb.mxu3 %v983_v57 }
 0x16a   : > { %v643_v10 = vpop.xlane.xlu1 %642  ;;  %v641_v11 = vpop.xlane.xlu0 %640 }
 0x16b   : > { %v1073_v14 = vperm.slane %v643_v10, %v2910_v39  ;;  %v1071_v15 = vperm.slane %v641_v11, %v2902_v24  ;;  %v645_v17 = vpop.xlane.xlu2 %644 }
 0x16c   : > { %v1075_v19 = vperm.slane %v645_v17, %v2917_v49 }
 0x16d   : > { %v1072_v23 = vsel %vm827_vm12, %v1071_v15, %v1070_v18 }
 0x16e   : > { %v1074_v26 = vsel %vm831_vm13, %v1073_v14, %v1072_v23 }
 0x16f   : > { %v1076_v30 = vsel %vm835_vm14, %v1075_v19, %v1074_v26 }
 0x170   : > { %1126 = vmatmul.f32.vlgmr.msrb.gmra.mxu0 %v1076_v30  ;;  %1166 = vmatmul.f32.vlgmr.msrb.gmra.mxu2 %v1076_v30 }
 0x172   : > { %v649_v33 = vpop.xlane.xlu1 %648  ;;  %v647_v34 = vpop.xlane.xlu0 %646 }
 0x173   : > { %v651_v38 = vpop.xlane.xlu2 %650  ;;  %v1078_v46 = vperm.slane %v649_v33, %v2824_v62  ;;  %v1077_v50 = vperm.slane %v647_v34, %v2821_v59 }
 0x174   : > { %v1080_v60 = vperm.slane %v651_v38, %v2827_v2 }
 0x175   : > { %v1079_v61 = vsel %vm779_vm0, %v1078_v46, %v1077_v50 }
 0x176   : > { %v1081_v59 = vsel %vm783_vm1, %v1080_v60, %v1079_v61 }
 0x17a   : > { %v653_v51 = vpop.xlane.xlu0 %652  ;;  %v655_v52 = vpop.xlane.xlu1 %654 }
 0x17b   : > { %v657_v55 = vpop.xlane.xlu2 %656  ;;  %v1082_v0 = vperm.slane %v653_v51, %v2832_v6  ;;  %v1084_v62 = vperm.slane %v655_v52, %v2844_v22 }
 0x17c   : > { %v1086_v7 = vperm.slane %v657_v55, %v2848_v25 }
 0x17d   : > { %v1083_v3 = vsel %vm787_vm2, %v1082_v0, %v1081_v59 }
 0x17e   : > { %v1085_v9 = vsel %vm791_vm3, %v1084_v62, %v1083_v3 }
 0x17f   : > { %v1087_v10 = vsel %vm795_vm4, %v1086_v7, %v1085_v9 }
 0x182   : > { %v659_v4 = vpop.xlane.xlu0 %658  ;;  %v661_v5 = vpop.xlane.xlu1 %660 }
 0x183   : > { %v663_v8 = vpop.xlane.xlu2 %662  ;;  %v1088_v2 = vperm.slane %v659_v4, %v2851_v27  ;;  %v1090_v6 = vperm.slane %v661_v5, %v2861_v37  ;;  %v3054_v5 = vshrl.u32 %v774_v48, 7 }
 0x184   : > { %v1092_v12 = vperm.slane %v663_v8, %v2869_v44 }
 0x185   : > { %v1089_v11 = vsel %vm799_vm5, %v1088_v2, %v1087_v10  ;;  %2061 = vset.pattern.permute.xlu2 %v3054_v5  ;;  %v3058_v7 = vadd.s32 16, %v3054_v5  ;;  %v3061_v8 = vadd.s32 8, %v3054_v5  ;;  %v2467_v10 = vmov 512.0  }
 0x186   : > { %v1091_v14 = vsel %vm803_vm6, %v1090_v6, %v1089_v11 }
 0x187   : > { %v1093_v17 = vsel %vm807_vm7, %v1092_v12, %v1091_v14  ;;  %2063 = vset.pattern.permute.xlu1 %v3058_v7  ;;  %2062 = vset.pattern.permute.xlu0 %v3061_v8 }
 0x18a   : > { %v665_v22 = vpop.xlane.xlu0 %664  ;;  %v667_v13 = vpop.xlane.xlu1 %666 }
 0x18b   : > { %v1094_v15 = vperm.slane %v665_v22, %v2874_v47  ;;  %v669_v25 = vpop.xlane.xlu2 %668  ;;  %v1096_v18 = vperm.slane %v667_v13, %v2882_v58 }
 0x18c   : > { %v1098_v19 = vperm.slane %v669_v25, %v2890_v1 }
 0x18d   : > { %v1095_v27 = vsel %vm811_vm8, %v1094_v15, %v1093_v17 }
 0x18e   : > { %v1097_v37 = vsel %vm815_vm9, %v1096_v18, %v1095_v27 }
 0x18f   : > { %v1099_v23 = vsel %vm819_vm10, %v1098_v19, %v1097_v37 }
 0x192   : > { %v671_v20 = vpop.xlane.xlu0 %670  ;;  %v673_v21 = vpop.xlane.xlu1 %672 }
 0x193   : > { %v1100_v44 = vperm.slane %v671_v20, %v2896_v16  ;;  %v1102_v26 = vperm.slane %v673_v21, %v2902_v24  ;;  %v675_v47 = vpop.xlane.xlu2 %674 }
 0x194   : > { %v1104_v29 = vperm.slane %v675_v47, %v2910_v39 }
 0x195   : > { %v1101_v28 = vsel %vm823_vm11, %v1100_v44, %v1099_v23 }
 0x196   : > { %v1103_v58 = vsel %vm827_vm12, %v1102_v26, %v1101_v28 }
 0x197   : > { %v1105_v31 = vsel %vm831_vm13, %v1104_v29, %v1103_v58 }
 0x19a   : > { %v677_v30 = vpop.xlane.xlu0 %676 }
 0x19b   : > { %v1106_v1 = vperm.slane %v677_v30, %v2917_v49  ;;  %v887_v33 = vpop.f32.mrf.mxu0 }
 0x19d   : > { %v1107_v32 = vsel %vm835_vm14, %v1106_v1, %v1105_v31 }
 0x19e   : > { %1146 = vmatmul.f32.vlgmr.msrb.gmra.mxu1 %v1107_v32  ;;  %1186 = vmatmul.f32.vlgmr.msrb.gmra.mxu3 %v1107_v32 }
 0x1a1   : > { %v927_v24 = vpop.f32.mrf.mxu2 }
 0x1c4   : > { %v907_v16 = vpop.f32.mrf.mxu1 }
 0x1c5   : > { %v3025_v34 = vadd.f32 %v907_v16, %v887_v33 }
 0x1c7   : > { %v1190_v39 = vmul.f32 %v3025_v34, %v3025_v34  ;;  %v1234_v49 = vsel %vm1192_vm15, %v3025_v34, 0.0 }
 0x1c9   : > { %v1193_v41 = vsel %vm1192_vm15, %v1190_v39, 0.0 }
 0x1ca   : > { %v947_v35 = vpop.f32.mrf.mxu3 }
 0x1cb   : > { %v3027_v36 = vadd.f32 %v947_v35, %v927_v24 }
 0x1cd   : > { %v1235_v38 = vsel %vm1192_vm15, %v3027_v36, 0.0  ;;  %v1191_v63 = vmul.f32 %v3027_v36, %v3027_v36 }
 0x1ce   : > { %v1236_v40 = vadd.f32 %v1235_v38, %v1234_v49 }
 0x1cf   : > { %v1194_v42 = vsel %vm1192_vm15, %v1191_v63, 0.0 }
 0x1d0   : > { %1237 = vadd.xlane.f32.xlu0 %v1236_v40  ;;  %v1195_v43 = vadd.f32 %v1194_v42, %v1193_v41  ;;  %v3074_v41 = vadd.s32 40, %v3054_v5  ;;  %v3077_v42 = vadd.s32 64, %v3054_v5 }
 0x1d2   : > { %1196 = vadd.xlane.f32.xlu1 %v1195_v43  ;;  %v3086_v43 = vadd.s32 56, %v3054_v5 }
 0x1ed   : > { %v1127_v46 = vpop.f32.mrf.mxu0 }
 0x1f3   : > { %v1167_v51 = vpop.f32.mrf.mxu2 }
 0x21b   : > { %v1147_v45 = vpop.f32.mrf.mxu1 }
 0x21c   : > { %v3039_v50 = vadd.f32 %v1147_v45, %v1127_v46  ;;  %v3089_v45 = vadd.s32 104, %v3054_v5  ;;  %v3092_v46 = vadd.s32 32, %v3054_v5 }
 0x21e   : > { %v1198_v54 = vmul.f32 %v3039_v50, %v3039_v50  ;;  %v1239_v55 = vsel %vm1192_vm15, %v3039_v50, 0.0 }
 0x220   : > { %v1200_v61 = vsel %vm1192_vm15, %v1198_v54, 0.0 }
 0x221   : > { %v1187_v52 = vpop.f32.mrf.mxu3 }
 0x222   : > { %v3041_v53 = vadd.f32 %v1187_v52, %v1167_v51  ;;  %v3101_v51 = vadd.s32 48, %v3054_v5 }
 0x224   : > { %v1240_v56 = vsel %vm1192_vm15, %v3041_v53, 0.0  ;;  %v1199_v57 = vmul.f32 %v3041_v53, %v3041_v53 }
 0x225   : > { %v1241_v60 = vadd.f32 %v1240_v56, %v1239_v55  ;;  %v3112_v55 = vadd.s32 96, %v3054_v5  ;;  %v3115_v56 = vadd.s32 72, %v3054_v5 }
 0x226   : > { %v1201_v0 = vsel %vm1192_vm15, %v1199_v57, 0.0  ;;  %v3125_v57 = vadd.s32 88, %v3054_v5 }
 0x227   : > { %1242 = vadd.xlane.f32.xlu1 %v1241_v60  ;;  %v1202_v59 = vadd.f32 %v1201_v0, %v1200_v61  ;;  %v3132_v60 = vadd.s32 112, %v3054_v5 }
 0x229   : > { %1203 = vadd.xlane.f32.xlu2 %v1202_v59 }
 0x243   : > { %v1238_v23 = vpop.xlane.xlu0 %1237 }
 0x245   : > { %v1197_v62 = vpop.xlane.xlu1 %1196 }
 0x29a   : > { %v1243_v21 = vpop.xlane.xlu1 %1242 }
 0x29b   : > { %v1244_v47 = vadd.f32 %v1243_v21, %v1238_v23 }
 0x29c   : > { %v1204_v3 = vpop.xlane.xlu2 %1203 }
 0x29d   : > { %v1205_v4 = vadd.f32 %v1204_v3, %v1197_v62 }
 0x29f   : > { %2127 = vrsqrt.f32 %v1205_v4  ;;  %vm1213_vm0 = vcmp.eq.f32.partialorder %v1205_v4, inf  ;;  %v1216_v15 = vand.u32 2147483648, %v1205_v4  ;;  %vm1215_vm1 = vcmp.eq.f32.partialorder %v1205_v4, 0.0 }
 0x2a0   : > { %2129 = vrcp.f32 %v2467_v10 }
 0x2a5   : > { %v2128_v9 = vpop.eup %2127 }
 0x2a6   : > { %v1207_v2 = vmul.f32 %v2128_v9, %v1205_v4  ;;  %v2130_v12 = vpop.eup %2129 }
 0x2a7   : > { %v1246_v14 = vmul.f32 512.0, %v2130_v12  ;;  %vm1250_vm2 = vweird.f32 %v2130_v12 }
 0x2a8   : > { %v1208_v6 = vmul.f32 %v2128_v9, %v1207_v2 }
 0x2a9   : > { %v1247_v27 = vsub.f32 1.0, %v1246_v14 }
 0x2aa   : > { %v1209_v11 = vmul.f32 0.5, %v1208_v6 }
 0x2ab   : > { %v1248_v19 = vmul.f32 %v2130_v12, %v1247_v27 }
 0x2ac   : > { %v1210_v48 = vsub.f32 1.5, %v1209_v11 }
 0x2ad   : > { %v1249_v20 = vadd.f32 %v2130_v12, %v1248_v19  ;;  %v2135_v19 = vld [vmem:[%s2699_s30 + $0x30] sm:$0xff] }
 0x2ae   : > { %v1211_v22 = vmul.f32 %v2128_v9, %v1210_v48  ;;  %v2133_v48 = vld [vmem:[%s2699_s30 + $0x8] sm:$0xff] }
 0x2af   : > { %v1251_v29 = vsel %vm1250_vm2, %v2130_v12, %v1249_v20  ;;  %v2136_v20 = vld [vmem:[%s2702_s15 + $0x30] sm:$0xff] }
 0x2b0   : > { %v1212_v13 = vmul.f32 %v1211_v22, %v1205_v4  ;;  %v1252_v31 = vmul.f32 %v1251_v29, %v1244_v47  ;;  %v2134_v22 = vld [vmem:[%s2702_s15 + $0x8] sm:$0xff] }
 0x2b2   : > { %v1214_v25 = vsel %vm1213_vm0, %v1205_v4, %v1212_v13  ;;  %vm1253_vm7 = vcmp.lt.f32.partialorder %v3025_v34, %v1252_v31  ;;  %vm1259_vm8 = vcmp.lt.f32.partialorder %v3039_v50, %v1252_v31  ;;  %vm1260_vm9 = vcmp.lt.f32.partialorder %v3041_v53, %v1252_v31 }
 0x2b3   : > { %v1217_v17 = vsel %vm1215_vm1, %v1216_v15, %v1214_v25  ;;  %vm1254_vm10 = vcmp.lt.f32.partialorder %v3027_v36, %v1252_v31 }
 0x2b4   : > { %v1218_v18 = vmax.f32 %v1217_v17, 1e-12 }
 0x2b6   : > { %2131 = vrcp.f32 %v1218_v18  ;;  %v1230_v28 = vand.u32 2147483648, %v1218_v18  ;;  %v1228_v30 = vand.u32 2147483647, %v1218_v18  ;;  %vm1224_vm4 = vweird.f32 %v1218_v18 }
 0x2b8   : > { %v1231_v32 = vor.u32 1.1754944e-38, %v1230_v28  ;;  %vm1229_vm6 = vcmp.eq.f32.partialorder %v1228_v30, 8.507059e+37 }
 0x2bc   : > { %v2132_v37 = vpop.eup %2131 }
 0x2bd   : > { %v1220_v44 = vmul.f32 %v2132_v37, %v1218_v18  ;;  %vm1225_vm3 = vweird.f32 %v2132_v37 }
 0x2be   : > { %vm1226_vm5 = vmor %vm1224_vm4, %vm1225_vm3 }
 0x2bf   : > { %v1221_v26 = vsub.f32 1.0, %v1220_v44 }
 0x2c1   : > { %v1222_v58 = vmul.f32 %v2132_v37, %v1221_v26 }
 0x2c3   : > { %v1223_v1 = vadd.f32 %v2132_v37, %v1222_v58  ;;  %v2137_v58 = vld [vmem:[%s2699_s30 + $0x58] sm:$0xff] }
 0x2c5   : > { %v1227_v16 = vsel %vm1226_vm5, %v2132_v37, %v1223_v1  ;;  %v2138_v1 = vld [vmem:[%s2702_s15 + $0x58] sm:$0xff] }
 0x2c6   : > { %v1232_v33 = vsel %vm1229_vm6, %v1231_v32, %v1227_v16 }
 0x2c7   : > { %v1255_v24 = vmul.f32 %v1232_v33, %v3025_v34  ;;  %v1261_v35 = vmul.f32 %v1232_v33, %v3039_v50  ;;  %v1262_v39 = vmul.f32 %v1232_v33, %v3041_v53  ;;  %v3080_v34 = vadd.s32 24, %v3054_v5 }
 0x2c8   : > { %v3098_v50 = vadd.s32 80, %v3054_v5  ;;  %v1256_v52 = vmul.f32 %v1232_v33, %v3027_v36  ;;  %v3122_v36 = vadd.s32 120, %v3054_v5 }
 0x2c9   : > { %v1257_v49 = vsel %vm1253_vm7, 0.0, %v1255_v24  ;;  %v1263_v38 = vsel %vm1259_vm8, 0.0, %v1261_v35  ;;  %v3071_v63 = vsel %vm1260_vm9, 0.0, %v1262_v39 }
 0x2ca   : > { %v1265_v40 = vperm.slane %v1257_v49, 0  ;;  %v1258_v53 = vsel %vm1254_vm10, 0.0, %v1256_v52  ;;  %v3137_v61 = vperm.slane %v1263_v38, 0  ;;  %v3157_v0 = vperm.slane %v3071_v63, 0  ;;  %v2139_v49 = vld [vmem:[%s2699_s30 + $0x80] sm:$0xff] }
 0x2cb   : > { %v3108_v54 = vperm.slane %v1258_v53, 0  ;;  %v2140_v63 = vld [vmem:[%s2702_s15 + $0x80] sm:$0xff] }
 0x2cc   : > { %1282 = vperm.xlu1 %2063, %v1265_v40   ;;  %1276 = vperm.xlu0 %2062, %v1265_v40  }
 0x2cd   : > { %1270 = vperm.xlu2 %2061, %v1265_v40  }
 0x2d4   : > { %2066 = vset.pattern.permute.xlu1 %v3074_v41  ;;  %2069 = vset.pattern.permute.xlu0 %v3077_v42 }
 0x2d5   : > { %2064 = vset.pattern.permute.xlu2 %v3080_v34 }
 0x2dc   : > { %1300 = vperm.xlu1 %2066, %v1265_v40   ;;  %1318 = vperm.xlu0 %2069, %v1265_v40  }
 0x2dd   : > { %1288 = vperm.xlu2 %2064, %v1265_v40  }
 0x2e4   : > { %2068 = vset.pattern.permute.xlu1 %v3086_v43  ;;  %2074 = vset.pattern.permute.xlu0 %v3089_v45 }
 0x2e5   : > { %2065 = vset.pattern.permute.xlu2 %v3092_v46 }
 0x2ec   : > { %1312 = vperm.xlu1 %2068, %v1265_v40   ;;  %1348 = vperm.xlu0 %2074, %v1265_v40  }
 0x2ed   : > { %1294 = vperm.xlu2 %2065, %v1265_v40  }
 0x2f4   : > { %2071 = vset.pattern.permute.xlu1 %v3098_v50  ;;  %2079 = vset.pattern.permute.xlu0 %v3058_v7 }
 0x2f5   : > { %2067 = vset.pattern.permute.xlu2 %v3101_v51 }
 0x2fc   : > { %1330 = vperm.xlu1 %2071, %v1265_v40   ;;  %1379 = vperm.xlu0 %2079, %v3108_v54  }
 0x2fd   : > { %1306 = vperm.xlu2 %2067, %v1265_v40  }
 0x304   : > { %2073 = vset.pattern.permute.xlu1 %v3112_v55  ;;  %2084 = vset.pattern.permute.xlu0 %v3086_v43 }
 0x305   : > { %2070 = vset.pattern.permute.xlu2 %v3115_v56 }
 0x30c   : > { %1342 = vperm.xlu1 %2073, %v1265_v40   ;;  %1409 = vperm.xlu0 %2084, %v3108_v54  }
 0x30d   : > { %1324 = vperm.xlu2 %2070, %v1265_v40  }
 0x314   : > { %2076 = vset.pattern.permute.xlu1 %v3122_v36  ;;  %2089 = vset.pattern.permute.xlu0 %v3112_v55 }
 0x315   : > { %2072 = vset.pattern.permute.xlu2 %v3125_v57 }
 0x31c   : > { %1360 = vperm.xlu1 %2076, %v1265_v40   ;;  %1439 = vperm.xlu0 %2089, %v3108_v54  }
 0x31d   : > { %1336 = vperm.xlu2 %2072, %v1265_v40  }
 0x324   : > { %2078 = vset.pattern.permute.xlu1 %v3061_v8  ;;  %2094 = vset.pattern.permute.xlu0 %v3061_v8 }
 0x325   : > { %2075 = vset.pattern.permute.xlu2 %v3132_v60 }
 0x327   : > { %v3188_v2 = vpop.permute.xlu2 %1270 }
 0x32c   : > { %1373 = vperm.xlu1 %2078, %v3108_v54   ;;  %1502 = vperm.xlu0 %2094, %v3137_v61  }
 0x32d   : > { %1354 = vperm.xlu2 %2075, %v1265_v40  }
 0x334   : > { %2081 = vset.pattern.permute.xlu1 %v3092_v46  ;;  %2099 = vset.pattern.permute.xlu0 %v3101_v51 }
 0x335   : > { %2077 = vset.pattern.permute.xlu2 %v3054_v5 }
 0x337   : > { %v3194_v10 = vpop.permute.xlu2 %1288 }
 0x33c   : > { %1391 = vperm.xlu1 %2081, %v3108_v54   ;;  %1532 = vperm.xlu0 %2099, %v3137_v61  }
 0x33d   : > { %1367 = vperm.xlu2 %2077, %v3108_v54  }
 0x33e   : > { %v1277_v59 = vpop.permute.xlu0 %1276  ;;  %v3198_v6 = vpop.permute.xlu1 %1282 }
 0x33f   : > { %v1460_v12 = vmul.f32 %v2133_v48, %v1277_v59 }
 0x344   : > { %2083 = vset.pattern.permute.xlu1 %v3101_v51  ;;  %2104 = vset.pattern.permute.xlu0 %v3125_v57 }
 0x345   : > { %2080 = vset.pattern.permute.xlu2 %v3080_v34 }
 0x347   : > { %v3206_v15 = vpop.permute.xlu2 %1294 }
 0x34c   : > { %1403 = vperm.xlu1 %2083, %v3108_v54   ;;  %1562 = vperm.xlu0 %2104, %v3137_v61  }
 0x34d   : > { %1385 = vperm.xlu2 %2080, %v3108_v54  }
 0x34e   : > { %v3171_v62 = vpop.permute.xlu0 %1318  ;;  %v3210_v25 = vpop.permute.xlu1 %1300 }
 0x354   : > { %2086 = vset.pattern.permute.xlu1 %v3115_v56  ;;  %2109 = vset.pattern.permute.xlu0 %v3054_v5 }
 0x355   : > { %2082 = vset.pattern.permute.xlu2 %v3074_v41 }
 0x357   : > { %v1307_v17 = vpop.permute.xlu2 %1306 }
 0x358   : > { %v1465_v37 = vmul.f32 %v2135_v19, %v1307_v17 }
 0x35c   : > { %1421 = vperm.xlu1 %2086, %v3108_v54   ;;  %1593 = vperm.xlu0 %2109, %v3157_v0  }
 0x35d   : > { %1397 = vperm.xlu2 %2082, %v3108_v54  }
 0x35e   : > { %v3176_v3 = vpop.permute.xlu0 %1348  ;;  %v3214_v18 = vpop.permute.xlu1 %1312 }
 0x364   : > { %2088 = vset.pattern.permute.xlu1 %v3125_v57  ;;  %2114 = vset.pattern.permute.xlu0 %v3074_v41 }
 0x365   : > { %2085 = vset.pattern.permute.xlu2 %v3077_v42 }
 0x367   : > { %v3219_v23 = vpop.permute.xlu2 %1324 }
 0x36c   : > { %1433 = vperm.xlu1 %2088, %v3108_v54   ;;  %1623 = vperm.xlu0 %2114, %v3157_v0  }
 0x36d   : > { %1415 = vperm.xlu2 %2085, %v3108_v54  }
 0x36e   : > { %v3181_v4 = vpop.permute.xlu0 %1379  ;;  %v3223_v26 = vpop.permute.xlu1 %1330 }
 0x374   : > { %2091 = vset.pattern.permute.xlu1 %v3132_v60  ;;  %2119 = vset.pattern.permute.xlu0 %v3098_v50 }
 0x375   : > { %2087 = vset.pattern.permute.xlu2 %v3098_v50 }
 0x377   : > { %v1337_v47 = vpop.permute.xlu2 %1336 }
 0x378   : > { %v1470_v30 = vmul.f32 %v2137_v58, %v1337_v47 }
 0x37c   : > { %1451 = vperm.xlu1 %2091, %v3108_v54   ;;  %1653 = vperm.xlu0 %2119, %v3157_v0  }
 0x37d   : > { %1427 = vperm.xlu2 %2087, %v3108_v54  }
 0x37e   : > { %v3186_v9 = vpop.permute.xlu0 %1409  ;;  %v3227_v28 = vpop.permute.xlu1 %1342 }
 0x384   : > { %2093 = vset.pattern.permute.xlu1 %v3054_v5  ;;  %2124 = vset.pattern.permute.xlu0 %v3122_v36 }
 0x385   : > { %2090 = vset.pattern.permute.xlu2 %v3089_v45 }
 0x387   : > { %v3232_v16 = vpop.permute.xlu2 %1354 }
 0x38c   : > { %1496 = vperm.xlu1 %2093, %v3137_v61   ;;  %1683 = vperm.xlu0 %2124, %v3157_v0  }
 0x38d   : > { %1445 = vperm.xlu2 %2090, %v3108_v54  }
 0x38e   : > { %v3192_v5 = vpop.permute.xlu0 %1439  ;;  %v3236_v33 = vpop.permute.xlu1 %1360 }
 0x394   : > { %2096 = vset.pattern.permute.xlu1 %v3080_v34 }
 0x395   : > { %2092 = vset.pattern.permute.xlu2 %v3122_v36 }
 0x397   : > { %v1368_v24 = vpop.permute.xlu2 %1367 }
 0x398   : > { %v1475_v38 = vmul.f32 %v2139_v49, %v1368_v24  ;;  %v2147_v49 = vld [vmem:[%s2702_s15] sm:$0xff] }
 0x39c   : > { %1514 = vperm.xlu1 %2096, %v3137_v61  }
 0x39d   : > { %1457 = vperm.xlu2 %2092, %v3108_v54  }
 0x39e   : > { %v1503_v11 = vpop.permute.xlu0 %1502  ;;  %v3240_v35 = vpop.permute.xlu1 %1373 }
 0x39f   : > { %v1686_v13 = vmul.f32 %v2134_v22, %v1503_v11  ;;  %v2141_v11 = vld [vmem:[%s2699_s30 + $0xa8] sm:$0xff] }
 0x3a1   : > { %v1718_v14 = vadd.f32 %v1686_v13, %v1460_v12  ;;  %v2142_v12 = vld [vmem:[%s2702_s15 + $0xa8] sm:$0xff] }
 0x3a3   : > { %1750 = vst [vmem:[%s3203_s27 + $0x8] sm:$0xff] %v1718_v14 }
 0x3a4   : > { %2098 = vset.pattern.permute.xlu1 %v3074_v41 }
 0x3a5   : > { %2095 = vset.pattern.permute.xlu2 %v3058_v7 }
 0x3ac   : > { %1526 = vperm.xlu1 %2098, %v3137_v61  }
 0x3ad   : > { %1508 = vperm.xlu2 %2095, %v3137_v61  }
 0x3ae   : > { %v1533_v27 = vpop.permute.xlu0 %1532  ;;  %v3249_v52 = vpop.permute.xlu1 %1391 }
 0x3af   : > { %v1691_v21 = vmul.f32 %v2136_v20, %v1533_v27  ;;  %v2143_v20 = vld [vmem:[%s2699_s30 + $0xd0] sm:$0xff] }
 0x3b1   : > { %v1723_v44 = vadd.f32 %v1691_v21, %v1465_v37 }
 0x3b3   : > { %1755 = vst [vmem:[%s3203_s27 + $0x30] sm:$0xff] %v1723_v44  ;;  %v2144_v44 = vld [vmem:[%s2702_s15 + $0xd0] sm:$0xff] }
 0x3b4   : > { %2101 = vset.pattern.permute.xlu1 %v3077_v42 }
 0x3b5   : > { %2097 = vset.pattern.permute.xlu2 %v3092_v46 }
 0x3bc   : > { %1544 = vperm.xlu1 %2101, %v3137_v61  }
 0x3bd   : > { %1520 = vperm.xlu2 %2097, %v3137_v61  }
 0x3be   : > { %v1563_v29 = vpop.permute.xlu0 %1562  ;;  %v3253_v54 = vpop.permute.xlu1 %1403 }
 0x3bf   : > { %v1696_v31 = vmul.f32 %v2138_v1, %v1563_v29 }
 0x3c1   : > { %v1728_v32 = vadd.f32 %v1696_v31, %v1470_v30 }
 0x3c3   : > { %1760 = vst [vmem:[%s3203_s27 + $0x58] sm:$0xff] %v1728_v32  ;;  %v2145_v32 = vld [vmem:[%s2699_s30] sm:$0xff] }
 0x3c4   : > { %2103 = vset.pattern.permute.xlu1 %v3098_v50  ;;  %v3245_v50 = vpop.permute.xlu2 %1385  ;;  %v1459_v24 = vmul.f32 %v2145_v32, %v3188_v2  ;;  %v2149_v2 = vld [vmem:[%s2699_s30 + $0x10] sm:$0xff]  ;;  %v2157_v32 = vld [vmem:[%s2699_s30 + $0x38] sm:$0xff] }
 0x3c5   : > { %2100 = vset.pattern.permute.xlu2 %v3086_v43 }
 0x3cc   : > { %1556 = vperm.xlu1 %2103, %v3137_v61   ;;  %v1398_v53 = vpop.permute.xlu2 %1397 }
 0x3cd   : > { %1538 = vperm.xlu2 %2100, %v3137_v61   ;;  %v1480_v48 = vmul.f32 %v2141_v11, %v1398_v53  ;;  %v2150_v11 = vld [vmem:[%s2702_s15 + $0x10] sm:$0xff] }
 0x3ce   : > { %v1594_v39 = vpop.permute.xlu0 %1593  ;;  %v3262_v17 = vpop.permute.xlu1 %1421 }
 0x3cf   : > { %v1701_v40 = vmul.f32 %v2140_v63, %v1594_v39  ;;  %v2146_v39 = vld [vmem:[%s2699_s30 + $0xf8] sm:$0xff] }
 0x3d0   : > { %v2148_v63 = vld [vmem:[%s2702_s15 + $0xf8] sm:$0xff] }
 0x3d1   : > { %v1733_v41 = vadd.f32 %v1701_v40, %v1475_v38 }
 0x3d3   : > { %1765 = vst [vmem:[%s3203_s27 + $0x80] sm:$0xff] %v1733_v41 }
 0x3d4   : > { %2106 = vset.pattern.permute.xlu1 %v3089_v45  ;;  %v3258_v14 = vpop.permute.xlu2 %1415 }
 0x3d5   : > { %2102 = vset.pattern.permute.xlu2 %v3115_v56 }
 0x3dc   : > { %1574 = vperm.xlu1 %2106, %v3137_v61   ;;  %v1428_v27 = vpop.permute.xlu2 %1427 }
 0x3dd   : > { %1550 = vperm.xlu2 %2102, %v3137_v61   ;;  %v1485_v21 = vmul.f32 %v2143_v20, %v1428_v27  ;;  %v2153_v20 = vld [vmem:[%s2699_s30 + $0x20] sm:$0xff] }
 0x3de   : > { %v1624_v59 = vpop.permute.xlu0 %1623  ;;  %v3266_v19 = vpop.permute.xlu1 %1433 }
 0x3df   : > { %v1706_v22 = vmul.f32 %v2142_v12, %v1624_v59  ;;  %v1461_v59 = vmul.f32 %v2149_v2, %v3198_v6 }
 0x3e1   : > { %v1738_v13 = vadd.f32 %v1706_v22, %v1480_v48 }
 0x3e3   : > { %1770 = vst [vmem:[%s3203_s27 + $0xa8] sm:$0xff] %v1738_v13  ;;  %v2152_v13 = vld [vmem:[%s2702_s15 + $0x18] sm:$0xff] }
 0x3e4   : > { %2108 = vset.pattern.permute.xlu1 %v3122_v36 }
 0x3e5   : > { %2105 = vset.pattern.permute.xlu2 %v3112_v55 }
 0x3e7   : > { %v3271_v29 = vpop.permute.xlu2 %1445 }
 0x3ec   : > { %1586 = vperm.xlu1 %2108, %v3137_v61  }
 0x3ed   : > { %1568 = vperm.xlu2 %2105, %v3137_v61  }
 0x3ee   : > { %v1654_v37 = vpop.permute.xlu0 %1653  ;;  %v3275_v58 = vpop.permute.xlu1 %1451 }
 0x3ef   : > { %v1711_v47 = vmul.f32 %v2144_v44, %v1654_v37  ;;  %v2154_v44 = vld [vmem:[%s2702_s15 + $0x20] sm:$0xff] }
 0x3f1   : > { %v1743_v36 = vadd.f32 %v1711_v47, %v1485_v21  ;;  %v1463_v21 = vmul.f32 %v2153_v20, %v3206_v15 }
 0x3f3   : > { %1775 = vst [vmem:[%s3203_s27 + $0xd0] sm:$0xff] %v1743_v36 }
 0x3f4   : > { %2111 = vset.pattern.permute.xlu1 %v3058_v7 }
 0x3f5   : > { %2107 = vset.pattern.permute.xlu2 %v3132_v60 }
 0x3f7   : > { %v1458_v30 = vpop.permute.xlu2 %1457 }
 0x3f8   : > { %v1490_v7 = vmul.f32 %v2146_v39, %v1458_v30  ;;  %v2156_v30 = vld [vmem:[%s2702_s15 + $0x28] sm:$0xff]  ;;  %v2158_v39 = vld [vmem:[%s2702_s15 + $0x38] sm:$0xff] }
 0x3fc   : > { %1605 = vperm.xlu1 %2111, %v3157_v0  }
 0x3fd   : > { %1580 = vperm.xlu2 %2107, %v3137_v61  }
 0x3fe   : > { %v1497_v1 = vpop.permute.xlu1 %1496  ;;  %v1684_v31 = vpop.permute.xlu0 %1683 }
 0x3ff   : > { %v1685_v38 = vmul.f32 %v2147_v49, %v1497_v1  ;;  %v1716_v40 = vmul.f32 %v2148_v63, %v1684_v31 }
 0x401   : > { %v1717_v41 = vadd.f32 %v1685_v38, %v1459_v24  ;;  %v1748_v53 = vadd.f32 %v1716_v40, %v1490_v7  ;;  %v1466_v24 = vmul.f32 %v2157_v32, %v3214_v18  ;;  %v2160_v38 = vld [vmem:[%s2702_s15 + $0x40] sm:$0xff]  ;;  %v2174_v32 = vld [vmem:[%s2702_s15 + $0x88] sm:$0xff] }
 0x403   : > { %1749 = vst [vmem:[%s3203_s27] sm:$0xff] %v1717_v41  ;;  %v2161_v41 = vld [vmem:[%s2699_s30 + $0x48] sm:$0xff] }
 0x404   : > { %1780 = vst [vmem:[%s3203_s27 + $0xf8] sm:$0xff] %v1748_v53  ;;  %2113 = vset.pattern.permute.xlu1 %v3092_v46  ;;  %v2151_v46 = vld [vmem:[%s2699_s30 + $0x18] sm:$0xff]  ;;  %v1468_v53 = vmul.f32 %v2161_v41, %v3219_v23 }
 0x405   : > { %2110 = vset.pattern.permute.xlu2 %v3061_v8  ;;  %v1462_v8 = vmul.f32 %v2151_v46, %v3194_v10 }
 0x407   : > { %v1509_v61 = vpop.permute.xlu2 %1508 }
 0x408   : > { %v1687_v48 = vmul.f32 %v2150_v11, %v1509_v61  ;;  %v2162_v61 = vld [vmem:[%s2702_s15 + $0x48] sm:$0xff]  ;;  %v2164_v11 = vld [vmem:[%s2702_s15 + $0x50] sm:$0xff] }
 0x40a   : > { %v1719_v12 = vadd.f32 %v1687_v48, %v1461_v59 }
 0x40c   : > { %1751 = vst [vmem:[%s3203_s27 + $0x10] sm:$0xff] %v1719_v12  ;;  %1617 = vperm.xlu1 %2113, %v3157_v0  }
 0x40d   : > { %1599 = vperm.xlu2 %2110, %v3157_v0  }
 0x40e   : > { %v1515_v22 = vpop.permute.xlu1 %1514 }
 0x40f   : > { %v1688_v27 = vmul.f32 %v2152_v13, %v1515_v22  ;;  %v2165_v22 = vld [vmem:[%s2699_s30 + $0x60] sm:$0xff] }
 0x410   : > { %v1471_v46 = vmul.f32 %v2165_v22, %v3227_v28  ;;  %v2184_v22 = vld [vmem:[%s2702_s15 + $0xb8] sm:$0xff] }
 0x411   : > { %v1720_v37 = vadd.f32 %v1688_v27, %v1462_v8  ;;  %v2166_v8 = vld [vmem:[%s2702_s15 + $0x60] sm:$0xff] }
 0x413   : > { %1752 = vst [vmem:[%s3203_s27 + $0x18] sm:$0xff] %v1720_v37  ;;  %v2168_v37 = vld [vmem:[%s2702_s15 + $0x68] sm:$0xff] }
 0x414   : > { %2116 = vset.pattern.permute.xlu1 %v3086_v43  ;;  %v2155_v43 = vld [vmem:[%s2699_s30 + $0x28] sm:$0xff] }
 0x415   : > { %2112 = vset.pattern.permute.xlu2 %v3080_v34  ;;  %v1464_v34 = vmul.f32 %v2155_v43, %v3210_v25  ;;  %v2171_v43 = vld [vmem:[%s2699_s30 + $0x78] sm:$0xff] }
 0x417   : > { %v1521_v6 = vpop.permute.xlu2 %1520 }
 0x418   : > { %v1689_v47 = vmul.f32 %v2154_v44, %v1521_v6 }
 0x41a   : > { %v1721_v36 = vadd.f32 %v1689_v47, %v1463_v21  ;;  %v2169_v21 = vld [vmem:[%s2699_s30 + $0x70] sm:$0xff] }
 0x41b   : > { %v1473_v44 = vmul.f32 %v2169_v21, %v3232_v16  ;;  %v2170_v47 = vld [vmem:[%s2702_s15 + $0x70] sm:$0xff] }
 0x41c   : > { %1753 = vst [vmem:[%s3203_s27 + $0x20] sm:$0xff] %v1721_v36  ;;  %1635 = vperm.xlu1 %2116, %v3157_v0  }
 0x41d   : > { %1611 = vperm.xlu2 %2112, %v3157_v0  }
 0x41e   : > { %v1527_v10 = vpop.permute.xlu1 %1526 }
 0x41f   : > { %v1690_v1 = vmul.f32 %v2156_v30, %v1527_v10 }
 0x421   : > { %v1722_v31 = vadd.f32 %v1690_v1, %v1464_v34  ;;  %v1474_v34 = vmul.f32 %v2171_v43, %v3236_v33 }
 0x423   : > { %1754 = vst [vmem:[%s3203_s27 + $0x28] sm:$0xff] %v1722_v31  ;;  %v2173_v31 = vld [vmem:[%s2699_s30 + $0x88] sm:$0xff] }
 0x424   : > { %2118 = vset.pattern.permute.xlu1 %v3115_v56  ;;  %v2159_v56 = vld [vmem:[%s2699_s30 + $0x40] sm:$0xff] }
 0x425   : > { %2115 = vset.pattern.permute.xlu2 %v3101_v51  ;;  %v1467_v51 = vmul.f32 %v2159_v56, %v3171_v62 }
 0x427   : > { %v1539_v15 = vpop.permute.xlu2 %1538 }
 0x428   : > { %v1692_v7 = vmul.f32 %v2158_v39, %v1539_v15  ;;  %v1476_v15 = vmul.f32 %v2173_v31, %v3240_v35 }
 0x42a   : > { %v1724_v49 = vadd.f32 %v1692_v7, %v1466_v24  ;;  %v2175_v7 = vld [vmem:[%s2699_s30 + $0x90] sm:$0xff] }
 0x42b   : > { %v1477_v33 = vmul.f32 %v2175_v7, %v3181_v4  ;;  %v2196_v7 = vld [vmem:[%s2702_s15 + $0xf0] sm:$0xff] }
 0x42c   : > { %1756 = vst [vmem:[%s3203_s27 + $0x38] sm:$0xff] %v1724_v49  ;;  %1647 = vperm.xlu1 %2118, %v3157_v0   ;;  %v2176_v49 = vld [vmem:[%s2702_s15 + $0x90] sm:$0xff] }
 0x42d   : > { %1629 = vperm.xlu2 %2115, %v3157_v0  }
 0x42e   : > { %v1545_v25 = vpop.permute.xlu1 %1544 }
 0x42f   : > { %v1693_v63 = vmul.f32 %v2160_v38, %v1545_v25  ;;  %v2177_v38 = vld [vmem:[%s2699_s30 + $0x98] sm:$0xff] }
 0x430   : > { %v1478_v35 = vmul.f32 %v2177_v38, %v3245_v50 }
 0x431   : > { %v1725_v40 = vadd.f32 %v1693_v63, %v1467_v51  ;;  %v2178_v63 = vld [vmem:[%s2702_s15 + $0x98] sm:$0xff] }
 0x433   : > { %1757 = vst [vmem:[%s3203_s27 + $0x40] sm:$0xff] %v1725_v40 }
 0x434   : > { %2121 = vset.pattern.permute.xlu1 %v3112_v55  ;;  %v2163_v55 = vld [vmem:[%s2699_s30 + $0x50] sm:$0xff] }
 0x435   : > { %2117 = vset.pattern.permute.xlu2 %v3077_v42  ;;  %v1469_v42 = vmul.f32 %v2163_v55, %v3223_v26  ;;  %v2181_v55 = vld [vmem:[%s2699_s30 + $0xb0] sm:$0xff] }
 0x436   : > { %v1481_v50 = vmul.f32 %v2181_v55, %v3253_v54 }
 0x437   : > { %v1551_v18 = vpop.permute.xlu2 %1550 }
 0x438   : > { %v1694_v2 = vmul.f32 %v2162_v61, %v1551_v18  ;;  %v2180_v61 = vld [vmem:[%s2702_s15 + $0xa0] sm:$0xff] }
 0x43a   : > { %v1726_v59 = vadd.f32 %v1694_v2, %v1468_v53  ;;  %v2179_v53 = vld [vmem:[%s2699_s30 + $0xa0] sm:$0xff] }
 0x43b   : > { %v1479_v4 = vmul.f32 %v2179_v53, %v3249_v52 }
 0x43c   : > { %1758 = vst [vmem:[%s3203_s27 + $0x48] sm:$0xff] %v1726_v59  ;;  %1665 = vperm.xlu1 %2121, %v3157_v0  }
 0x43d   : > { %1641 = vperm.xlu2 %2117, %v3157_v0  }
 0x43e   : > { %v1557_v62 = vpop.permute.xlu1 %1556 }
 0x43f   : > { %v1695_v48 = vmul.f32 %v2164_v11, %v1557_v62 }
 0x441   : > { %v1727_v12 = vadd.f32 %v1695_v48, %v1469_v42  ;;  %v2182_v42 = vld [vmem:[%s2702_s15 + $0xb0] sm:$0xff] }
 0x443   : > { %1759 = vst [vmem:[%s3203_s27 + $0x50] sm:$0xff] %v1727_v12 }
 0x444   : > { %2123 = vset.pattern.permute.xlu1 %v3132_v60  ;;  %v2167_v60 = vld [vmem:[%s2699_s30 + $0x68] sm:$0xff] }
 0x445   : > { %2120 = vset.pattern.permute.xlu2 %v3125_v57  ;;  %v1472_v57 = vmul.f32 %v2167_v60, %v3176_v3 }
 0x447   : > { %v1569_v23 = vpop.permute.xlu2 %1568 }
 0x448   : > { %v1697_v13 = vmul.f32 %v2166_v8, %v1569_v23  ;;  %v2183_v23 = vld [vmem:[%s2699_s30 + $0xb8] sm:$0xff] }
 0x449   : > { %v1482_v52 = vmul.f32 %v2183_v23, %v3186_v9 }
 0x44a   : > { %v1729_v26 = vadd.f32 %v1697_v13, %v1471_v46 }
 0x44c   : > { %1761 = vst [vmem:[%s3203_s27 + $0x60] sm:$0xff] %v1729_v26  ;;  %1677 = vperm.xlu1 %2123, %v3157_v0   ;;  %v2185_v26 = vld [vmem:[%s2699_s30 + $0xc0] sm:$0xff] }
 0x44d   : > { %1659 = vperm.xlu2 %2120, %v3157_v0   ;;  %v1483_v54 = vmul.f32 %v2185_v26, %v3258_v14  ;;  %v2189_v14 = vld [vmem:[%s2699_s30 + $0xd8] sm:$0xff] }
 0x44e   : > { %v1575_v27 = vpop.permute.xlu1 %1574 }
 0x44f   : > { %v1698_v6 = vmul.f32 %v2168_v37, %v1575_v27  ;;  %v2186_v27 = vld [vmem:[%s2702_s15 + $0xc0] sm:$0xff] }
 0x451   : > { %v1730_v28 = vadd.f32 %v1698_v6, %v1472_v57  ;;  %v2187_v6 = vld [vmem:[%s2699_s30 + $0xc8] sm:$0xff] }
 0x452   : > { %v1484_v9 = vmul.f32 %v2187_v6, %v3262_v17  ;;  %v2191_v17 = vld [vmem:[%s2699_s30 + $0xe0] sm:$0xff] }
 0x453   : > { %1762 = vst [vmem:[%s3203_s27 + $0x68] sm:$0xff] %v1730_v28  ;;  %v2188_v28 = vld [vmem:[%s2702_s15 + $0xc8] sm:$0xff] }
 0x455   : > { %2122 = vset.pattern.permute.xlu2 %v3089_v45  ;;  %v2172_v45 = vld [vmem:[%s2702_s15 + $0x78] sm:$0xff] }
 0x457   : > { %v1581_v20 = vpop.permute.xlu2 %1580 }
 0x458   : > { %v1699_v36 = vmul.f32 %v2170_v47, %v1581_v20  ;;  %v1486_v47 = vmul.f32 %v2189_v14, %v3266_v19  ;;  %v2193_v19 = vld [vmem:[%s2699_s30 + $0xe8] sm:$0xff] }
 0x459   : > { %v1488_v31 = vmul.f32 %v2193_v19, %v3271_v29 }
 0x45a   : > { %v1731_v10 = vadd.f32 %v1699_v36, %v1473_v44  ;;  %v2190_v36 = vld [vmem:[%s2702_s15 + $0xd8] sm:$0xff] }
 0x45c   : > { %1763 = vst [vmem:[%s3203_s27 + $0x70] sm:$0xff] %v1731_v10 }
 0x45d   : > { %1671 = vperm.xlu2 %2122, %v3157_v0  }
 0x45e   : > { %v1587_v3 = vpop.permute.xlu1 %1586 }
 0x45f   : > { %v1700_v30 = vmul.f32 %v2172_v45, %v1587_v3  ;;  %v2192_v45 = vld [vmem:[%s2702_s15 + $0xe0] sm:$0xff] }
 0x461   : > { %v1732_v1 = vadd.f32 %v1700_v30, %v1474_v34  ;;  %v1487_v34 = vmul.f32 %v2191_v17, %v3192_v5 }
 0x463   : > { %1764 = vst [vmem:[%s3203_s27 + $0x78] sm:$0xff] %v1732_v1 }
 0x467   : > { %v1600_v16 = vpop.permute.xlu2 %1599 }
 0x468   : > { %v1702_v24 = vmul.f32 %v2174_v32, %v1600_v16 }
 0x46a   : > { %v1734_v0 = vadd.f32 %v1702_v24, %v1476_v15  ;;  %v2194_v15 = vld [vmem:[%s2702_s15 + $0xe8] sm:$0xff] }
 0x46c   : > { %1766 = vst [vmem:[%s3203_s27 + $0x88] sm:$0xff] %v1734_v0  ;;  %v2195_v0 = vld [vmem:[%s2699_s30 + $0xf0] sm:$0xff] }
 0x46e   : > { %v1606_v39 = vpop.permute.xlu1 %1605 }
 0x46f   : > { %v1703_v25 = vmul.f32 %v2176_v49, %v1606_v39  ;;  %v1489_v39 = vmul.f32 %v2195_v0, %v3275_v58 }
 0x471   : > { %v1735_v56 = vadd.f32 %v1703_v25, %v1477_v33 }
 0x473   : > { %1767 = vst [vmem:[%s3203_s27 + $0x90] sm:$0xff] %v1735_v56 }
 0x477   : > { %v1612_v51 = vpop.permute.xlu2 %1611 }
 0x478   : > { %v1704_v40 = vmul.f32 %v2178_v63, %v1612_v51 }
 0x47a   : > { %v1736_v18 = vadd.f32 %v1704_v40, %v1478_v35 }
 0x47c   : > { %1768 = vst [vmem:[%s3203_s27 + $0x98] sm:$0xff] %v1736_v18 }
 0x47e   : > { %v1618_v41 = vpop.permute.xlu1 %1617 }
 0x47f   : > { %v1705_v2 = vmul.f32 %v2180_v61, %v1618_v41 }
 0x481   : > { %v1737_v59 = vadd.f32 %v1705_v2, %v1479_v4 }
 0x483   : > { %1769 = vst [vmem:[%s3203_s27 + $0xa0] sm:$0xff] %v1737_v59 }
 0x487   : > { %v1630_v62 = vpop.permute.xlu2 %1629 }
 0x488   : > { %v1707_v11 = vmul.f32 %v2182_v42, %v1630_v62 }
 0x48a   : > { %v1739_v48 = vadd.f32 %v1707_v11, %v1481_v50 }
 0x48c   : > { %1771 = vst [vmem:[%s3203_s27 + $0xb0] sm:$0xff] %v1739_v48 }
 0x48e   : > { %v1636_v12 = vpop.permute.xlu1 %1635 }
 0x48f   : > { %v1708_v46 = vmul.f32 %v2184_v22, %v1636_v12 }
 0x491   : > { %v1740_v8 = vadd.f32 %v1708_v46, %v1482_v52 }
 0x493   : > { %1772 = vst [vmem:[%s3203_s27 + $0xb8] sm:$0xff] %v1740_v8 }
 0x497   : > { %v1642_v13 = vpop.permute.xlu2 %1641 }
 0x498   : > { %v1709_v60 = vmul.f32 %v2186_v27, %v1642_v13 }
 0x49a   : > { %v1741_v57 = vadd.f32 %v1709_v60, %v1483_v54 }
 0x49c   : > { %1773 = vst [vmem:[%s3203_s27 + $0xc0] sm:$0xff] %v1741_v57 }
 0x49e   : > { %v1648_v37 = vpop.permute.xlu1 %1647 }
 0x49f   : > { %v1710_v20 = vmul.f32 %v2188_v28, %v1648_v37 }
 0x4a1   : > { %v1742_v21 = vadd.f32 %v1710_v20, %v1484_v9 }
 0x4a3   : > { %1774 = vst [vmem:[%s3203_s27 + $0xc8] sm:$0xff] %v1742_v21 }
 0x4a7   : > { %v1660_v44 = vpop.permute.xlu2 %1659 }
 0x4a8   : > { %v1712_v10 = vmul.f32 %v2190_v36, %v1660_v44 }
 0x4aa   : > { %v1744_v3 = vadd.f32 %v1712_v10, %v1486_v47 }
 0x4ac   : > { %1776 = vst [vmem:[%s3203_s27 + $0xd8] sm:$0xff] %v1744_v3 }
 0x4ae   : > { %v1666_v43 = vpop.permute.xlu1 %1665 }
 0x4af   : > { %v1713_v30 = vmul.f32 %v2192_v45, %v1666_v43 }
 0x4b1   : > { %v1745_v1 = vadd.f32 %v1713_v30, %v1487_v34 }
 0x4b3   : > { %1777 = vst [vmem:[%s3203_s27 + $0xe0] sm:$0xff] %v1745_v1 }
 0x4b7   : > { %v1672_v16 = vpop.permute.xlu2 %1671 }
 0x4b8   : > { %v1714_v32 = vmul.f32 %v2194_v15, %v1672_v16 }
 0x4ba   : > { %v1746_v24 = vadd.f32 %v1714_v32, %v1488_v31 }
 0x4bc   : > { %1778 = vst [vmem:[%s3203_s27 + $0xe8] sm:$0xff] %v1746_v24 }
 0x4be   : > { %v1678_v5 = vpop.permute.xlu1 %1677 }
 0x4bf   : > { %v1715_v33 = vmul.f32 %v2196_v7, %v1678_v5 }
 0x4c1   : > { %v1747_v29 = vadd.f32 %v1715_v33, %v1489_v39 }
 0x4c3   : > { %1779 = vst [vmem:[%s3203_s27 + $0xf0] sm:$0xff] %v1747_v29 }
 0x4c4   : > { %2404 = shalt.err (!%p2401_p10)
}
 0x4c5   : > { %s2468_s10 = smov 128   ;;  %s2469_s26 = smov 8  }
 0x4c6   : > { %1988 = dma.vmem_to_hbm [thread:$0]  (%p2581_p7), %s1795_s4, 4096, %s1797_s13, %s1782_s25, %s2468_s10, %s2468_s10, %s2469_s26  }
 0x4c7 PF: > { %s1811_s8 = sand.u32 1, %s2447_s21   ;;  %p3475_p13 = scmp.ge.s32.totalorder %s2459_s24, 2 }
 0x4c8   : > { %s1812_s23 = scalar_lea.sflag [#allocation4], %s1811_s8 }
 0x4c9   : > { %p2011_p8 = pnand %p3475_p13, %p2540_p6 }
 0x4cb   : > { %p2012_p9 = pneg %p2011_p8 }
 0x4cd   : > { %2442 = dma.done.wait (%p2012_p9), %s1812_s23, 4096  }
 0x4ce   : > { %2444 = vsyncadd (%p2012_p9), %s1812_s23, 4294963200  ;;  %s3476_s30 = sld [smem:[#allocation20_spill]]  ;;  %p26_p12 = scmp.ge.s32.totalorder %s2562_s12, 4  }
 0x4cf   : > { %s3477_s23 = sld [smem:[#allocation21_spill]]  ;;  %s3478_s21 = smov %s2451_s22 }
 0x4d0   : > { %s3480_s24 = smov %s2562_s12  ;;  %28 = sbr.rel (!%p26_p12) target bundleno = 15 (0xf), region = 134 }
 0x4d4   : > { %s3479_s22 = smov %s3476_s30 }
 0x4d5   :  { %1818 = vsyncpa [#allocation3], 1 }
 0x4d6   :  { %1820 = vsyncpa [#allocation3 + $0x1], 1 }
 0x4d7   :  { %1821 = vsyncpa [#allocation6], 1 }
 0x4d8   :  { %1823 = vsyncpa [#allocation6 + $0x1], 1 }
 0x4d9   :  { %1824 = vsyncpa [#allocation9], 1 }
 0x4da   :  { %1826 = vsyncpa [#allocation9 + $0x1], 1 }
 0x4db   :  { %1827 = vsyncpa [#allocation12], 1 }
 0x4dc   :  { %1828 = vsyncpa [#allocation4], 1 }
 0x4dd   :  { %1830 = vsyncpa [#allocation4 + $0x1], 1 }

</bundles_post_ra>
